<compile_context>
chip_gen: v5e
topology: v5e:2x2
jax: 0.10.0
libtpu: 0.0.40
codegen_flags: <defaults>
</compile_context>

<pallas_src>
import functools
import math

import jax
import jax.numpy as jnp
from jax import lax
from jax.experimental import pallas as pl
from jax.experimental.pallas import tpu as pltpu


# ---------------------------------------------------------------------------
# In-kernel helpers (operate on plain arrays already loaded from refs)
# ---------------------------------------------------------------------------
def _layer_norm(x, eps):
    # LayerNorm(elementwise_affine=False): biased variance over last dim.
    mean = jnp.mean(x, axis=-1, keepdims=True)
    xc = x - mean
    var = jnp.mean(xc * xc, axis=-1, keepdims=True)
    return xc * lax.rsqrt(var + eps)


def _attention_block(q_in, k_in, v_in, mask, wq, wk, wv, wo, *,
                     n_head, qk_channel, v_channel, eps):
    """One MutiHeadAttention block (projections, per-head SDPA, out-proj,
    residual + LayerNorm). Returns (Sq, Cout) float32."""
    # Projections (MXU).
    q = jnp.dot(q_in, wq, preferred_element_type=jnp.float32)   # (Sq, H*Cqk)
    k = jnp.dot(k_in, wk, preferred_element_type=jnp.float32)   # (Skv, H*Cqk)
    v = jnp.dot(v_in, wv, preferred_element_type=jnp.float32)   # (Skv, H*Cv)

    sq = q.shape[0]
    cout = wo.shape[1]
    scale = 1.0 / math.sqrt(qk_channel)

    # Per-head attention; accumulate directly into the output projection so
    # the concatenated (Sq, H*Cv) tensor is never materialized.
    att = jnp.zeros((sq, cout), jnp.float32)
    for h in range(n_head):
        qh = q[:, h * qk_channel:(h + 1) * qk_channel]        # (Sq, Cqk)
        kh = k[:, h * qk_channel:(h + 1) * qk_channel]        # (Skv, Cqk)
        vh = v[:, h * v_channel:(h + 1) * v_channel]          # (Skv, Cv)
        # scores: contract channel dims without an explicit transpose.
        s = lax.dot_general(qh, kh, (((1,), (1,)), ((), ())),
                            preferred_element_type=jnp.float32) * scale + mask
        s = s - jnp.max(s, axis=-1, keepdims=True)
        p = jnp.exp(s)
        p = p / jnp.sum(p, axis=-1, keepdims=True)
        oh = jnp.dot(p, vh, preferred_element_type=jnp.float32)          # (Sq, Cv)
        woh = wo[h * v_channel:(h + 1) * v_channel, :]                   # (Cv, Cout)
        att = att + jnp.dot(oh, woh, preferred_element_type=jnp.float32)

    # Residual + LayerNorm (norm1(query + out)); requires Cin == Cout.
    return _layer_norm(q_in + att, eps)


# ---------------------------------------------------------------------------
# Fused DecoderLayer kernel (one batch element per grid step)
# ---------------------------------------------------------------------------
def _decoder_layer_kernel(dec_ref, enc_ref, mself_ref, menc_ref,
                          s_wq_ref, s_wk_ref, s_wv_ref, s_wo_ref,
                          c_wq_ref, c_wk_ref, c_wv_ref, c_wo_ref,
                          c_w1_ref, c_w2_ref,
                          o_ref, *, n_head, qk_channel, v_channel, eps):
    x = dec_ref[0].astype(jnp.float32)        # (S_dec, Cin)
    enc = enc_ref[0].astype(jnp.float32)      # (S_enc, Cin)
    m_self = mself_ref[0].astype(jnp.float32)  # (S_dec, S_dec) additive mask
    m_enc = menc_ref[0].astype(jnp.float32)    # (S_dec, S_enc) additive mask

    # Block 1: masked self-attention (no feedforward).
    y = _attention_block(
        x, x, x, m_self,
        s_wq_ref[...], s_wk_ref[...], s_wv_ref[...], s_wo_ref[...],
        n_head=n_head, qk_channel=qk_channel, v_channel=v_channel, eps=eps)

    # Block 2: cross-attention over encoder output + feedforward.
    z = _attention_block(
        y, enc, enc, m_enc,
        c_wq_ref[...], c_wk_ref[...], c_wv_ref[...], c_wo_ref[...],
        n_head=n_head, qk_channel=qk_channel, v_channel=v_channel, eps=eps)
    hid = jnp.maximum(
        jnp.dot(z, c_w1_ref[...], preferred_element_type=jnp.float32), 0.0)
    ff = jnp.dot(hid, c_w2_ref[...], preferred_element_type=jnp.float32)
    z = _layer_norm(z + ff, eps)

    o_ref[0] = z.astype(o_ref.dtype)


# ---------------------------------------------------------------------------
# Wrapper
# ---------------------------------------------------------------------------
def decoder_layer(encoder_output, decoder_input, mask_encode, mask_self, params, *,
                  n_head, qk_channel, v_channel):
    B, S_dec, Cin = decoder_input.shape
    S_enc = encoder_output.shape[1]
    ps, pc = params["att_self"], params["att_encode"]
    Cout = ps["wo"].shape[1]

    kernel = functools.partial(
        _decoder_layer_kernel, n_head=n_head, qk_channel=qk_channel,
        v_channel=v_channel, eps=1e-5)

    def batch_spec(s, c):
        # One batch element per grid step; (s, c) is the full per-batch slab.
        return pl.BlockSpec((1, s, c), lambda b: (b, 0, 0))

    def weight_spec(w):
        # Constant block index -> weight block stays resident across the grid.
        return pl.BlockSpec(w.shape, lambda b: (0, 0))

    in_specs = [
        batch_spec(S_dec, Cin),      # decoder_input
        batch_spec(S_enc, Cin),      # encoder_output
        batch_spec(S_dec, S_dec),    # mask_self   (additive)
        batch_spec(S_dec, S_enc),    # mask_encode (additive)
        weight_spec(ps["wq"]), weight_spec(ps["wk"]),
        weight_spec(ps["wv"]), weight_spec(ps["wo"]),
        weight_spec(pc["wq"]), weight_spec(pc["wk"]),
        weight_spec(pc["wv"]), weight_spec(pc["wo"]),
        weight_spec(pc["w1"]), weight_spec(pc["w2"]),
    ]
    args = [decoder_input, encoder_output, mask_self, mask_encode,
            ps["wq"], ps["wk"], ps["wv"], ps["wo"],
            pc["wq"], pc["wk"], pc["wv"], pc["wo"], pc["w1"], pc["w2"]]

    return pl.pallas_call(
        kernel,
        out_shape=jax.ShapeDtypeStruct((B, S_dec, Cout), decoder_input.dtype),
        grid=(B,),
        in_specs=in_specs,
        out_specs=pl.BlockSpec((1, S_dec, Cout), lambda b: (b, 0, 0)),
        compiler_params=pltpu.CompilerParams(
            dimension_semantics=("parallel",),   # shard batch across TCs on v7x
        ),
    )(*args)


# ---------------------------------------------------------------------------
# Pure-JAX reference (mirrors the PyTorch module) for correctness checking.
# ---------------------------------------------------------------------------
def _layer_norm_ref(x, eps=1e-5):
    mean = jnp.mean(x, axis=-1, keepdims=True)
    var = jnp.mean((x - mean) ** 2, axis=-1, keepdims=True)
    return (x - mean) / jnp.sqrt(var + eps)


def mha_ref(query, key, value, mask, p, *, n_head, qk_channel, v_channel, feedforward):
    hp = lax.Precision.HIGHEST
    B, Sq, _ = query.shape
    Skv = key.shape[1]
    Q = jnp.matmul(query, p["wq"], precision=hp).reshape(B, Sq, n_head, qk_channel).transpose(0, 2, 1, 3)
    K = jnp.matmul(key, p["wk"], precision=hp).reshape(B, Skv, n_head, qk_channel).transpose(0, 2, 1, 3)
    V = jnp.matmul(value, p["wv"], precision=hp).reshape(B, Skv, n_head, v_channel).transpose(0, 2, 1, 3)
    w = jnp.einsum("bhqc,bhkc->bhqk", Q, K, precision=hp) / math.sqrt(qk_channel)
    w = jax.nn.softmax(w + mask[:, None, :, :], axis=-1)
    out = jnp.einsum("bhqk,bhkc->bhqc", w, V, precision=hp).transpose(0, 2, 1, 3)
    out = out.reshape(B, Sq, n_head * v_channel)
    out = jnp.matmul(out, p["wo"], precision=hp)
    out = _layer_norm_ref(query + out)
    if feedforward:
        ff = jnp.matmul(jnp.maximum(jnp.matmul(out, p["w1"], precision=hp), 0.0),
                        p["w2"], precision=hp)
        out = _layer_norm_ref(out + ff)
    return out


def decoder_layer_ref(encoder_output, decoder_input, mask_encode, mask_self, params, *,
                      n_head, qk_channel, v_channel):
    x = mha_ref(decoder_input, decoder_input, decoder_input, mask_self,
                params["att_self"], n_head=n_head, qk_channel=qk_channel,
                v_channel=v_channel, feedforward=False)
    return mha_ref(x, encoder_output, encoder_output, mask_encode,
                   params["att_encode"], n_head=n_head, qk_channel=qk_channel,
                   v_channel=v_channel, feedforward=True)


# ---------------------------------------------------------------------------
# Demo / self-test
# ---------------------------------------------------------------------------
if __name__ == "__main__":
    # Small but lane-dense shapes (last dims multiples of 128 / full-extent).
    n_head = 4
    in_channel = 128          # == out_channel (required by the residual add)
    qk_channel = 32
    v_channel = 32
    out_channel = 128
    mid_channel = 256
    B, S_dec, S_enc = 2, 8, 16

    key = jax.random.PRNGKey(0)
    keys = jax.random.split(key, 12)
    wscale = 0.05

    def mk(k, shape):
        return jax.random.normal(k, shape, dtype=jnp.float32) * wscale

    params = {
        "att_self": {
            "wq": mk(keys[0], (in_channel, qk_channel * n_head)),
            "wk": mk(keys[1], (in_channel, qk_channel * n_head)),
            "wv": mk(keys[2], (in_channel, v_channel * n_head)),
            "wo": mk(keys[3], (v_channel * n_head, out_channel)),
        },
        "att_encode": {
            "wq": mk(keys[4], (in_channel, qk_channel * n_head)),
            "wk": mk(keys[5], (in_channel, qk_channel * n_head)),
            "wv": mk(keys[6], (in_channel, v_channel * n_head)),
            "wo": mk(keys[7], (v_channel * n_head, out_channel)),
            "w1": mk(keys[8], (out_channel, mid_channel)),
            "w2": mk(keys[9], (mid_channel, out_channel)),
        },
    }

    decoder_input = jax.random.normal(keys[10], (B, S_dec, in_channel), dtype=jnp.float32)
    encoder_output = jax.random.normal(keys[11], (B, S_enc, in_channel), dtype=jnp.float32)

    # Additive masks (same convention as the PyTorch module: added pre-softmax).
    causal = jnp.where(jnp.arange(S_dec)[:, None] >= jnp.arange(S_dec)[None, :],
                       0.0, -1e9).astype(jnp.float32)
    mask_self = jnp.broadcast_to(causal, (B, S_dec, S_dec))
    mask_encode = jnp.zeros((B, S_dec, S_enc), dtype=jnp.float32)

    out = decoder_layer(encoder_output, decoder_input, mask_encode, mask_self, params,
                        n_head=n_head, qk_channel=qk_channel, v_channel=v_channel)
    out = jax.block_until_ready(out)
    assert out.shape == (B, S_dec, out_channel)

    # Reference check against the pure-JAX port of the PyTorch module.
    ref = decoder_layer_ref(encoder_output, decoder_input, mask_encode, mask_self,
                            params, n_head=n_head, qk_channel=qk_channel,
                            v_channel=v_channel)
    max_err = float(jnp.max(jnp.abs(out - ref)))
    assert jnp.allclose(out, ref, atol=1e-3, rtol=1e-3), f"max_err={max_err}"

    print("KERNEL_OK")
</pallas_src>

<mosaic_0001>
module attributes {stable_mosaic.version = 11 : i64} {
  func.func @_decoder_layer_kernel(%arg0: i32, %arg1: memref<1x8x128xf32, #tpu.memory_space<vmem>>, %arg2: memref<1x16x128xf32, #tpu.memory_space<vmem>>, %arg3: memref<1x8x8xf32, #tpu.memory_space<vmem>>, %arg4: memref<1x8x16xf32, #tpu.memory_space<vmem>>, %arg5: memref<128x128xf32, #tpu.memory_space<vmem>>, %arg6: memref<128x128xf32, #tpu.memory_space<vmem>>, %arg7: memref<128x128xf32, #tpu.memory_space<vmem>>, %arg8: memref<128x128xf32, #tpu.memory_space<vmem>>, %arg9: memref<128x128xf32, #tpu.memory_space<vmem>>, %arg10: memref<128x128xf32, #tpu.memory_space<vmem>>, %arg11: memref<128x128xf32, #tpu.memory_space<vmem>>, %arg12: memref<128x128xf32, #tpu.memory_space<vmem>>, %arg13: memref<128x256xf32, #tpu.memory_space<vmem>>, %arg14: memref<256x128xf32, #tpu.memory_space<vmem>>, %arg15: memref<1x8x128xf32, #tpu.memory_space<vmem>>) attributes {dimension_semantics = [#tpu.dimension_semantics<parallel>], iteration_bounds = array<i64: 2>, scalar_prefetch = 0 : i64, scratch_operands = 0 : i64, tpu.core_type = #tpu.core_type<tc>, window_params = [{transform_indices = @transform_0, window_bounds = array<i64: 1, 8, 128>}, {transform_indices = @transform_1, window_bounds = array<i64: 1, 16, 128>}, {transform_indices = @transform_2, window_bounds = array<i64: 1, 8, 8>}, {transform_indices = @transform_3, window_bounds = array<i64: 1, 8, 16>}, {pipeline_mode = #tpu.pipeline_mode<synchronous>, transform_indices = @transform_4, window_bounds = array<i64: 128, 128>}, {pipeline_mode = #tpu.pipeline_mode<synchronous>, transform_indices = @transform_5, window_bounds = array<i64: 128, 128>}, {pipeline_mode = #tpu.pipeline_mode<synchronous>, transform_indices = @transform_6, window_bounds = array<i64: 128, 128>}, {pipeline_mode = #tpu.pipeline_mode<synchronous>, transform_indices = @transform_7, window_bounds = array<i64: 128, 128>}, {pipeline_mode = #tpu.pipeline_mode<synchronous>, transform_indices = @transform_8, window_bounds = array<i64: 128, 128>}, {pipeline_mode = #tpu.pipeline_mode<synchronous>, transform_indices = @transform_9, window_bounds = array<i64: 128, 128>}, {pipeline_mode = #tpu.pipeline_mode<synchronous>, transform_indices = @transform_10, window_bounds = array<i64: 128, 128>}, {pipeline_mode = #tpu.pipeline_mode<synchronous>, transform_indices = @transform_11, window_bounds = array<i64: 128, 128>}, {pipeline_mode = #tpu.pipeline_mode<synchronous>, transform_indices = @transform_12, window_bounds = array<i64: 128, 256>}, {pipeline_mode = #tpu.pipeline_mode<synchronous>, transform_indices = @transform_13, window_bounds = array<i64: 256, 128>}, {transform_indices = @transform_14, window_bounds = array<i64: 1, 8, 128>}]} {
    %c0 = arith.constant 0 : index
    %c0_0 = arith.constant 0 : index
    %c0_1 = arith.constant 0 : index
    %0 = vector.load %arg1[%c0, %c0_0, %c0_1] : memref<1x8x128xf32, #tpu.memory_space<vmem>>, vector<1x8x128xf32>
    %1 = vector.shape_cast %0 : vector<1x8x128xf32> to vector<8x128xf32>
    %c0_2 = arith.constant 0 : index
    %c0_3 = arith.constant 0 : index
    %c0_4 = arith.constant 0 : index
    %2 = vector.load %arg2[%c0_2, %c0_3, %c0_4] : memref<1x16x128xf32, #tpu.memory_space<vmem>>, vector<1x16x128xf32>
    %3 = vector.shape_cast %2 : vector<1x16x128xf32> to vector<16x128xf32>
    %c0_5 = arith.constant 0 : index
    %c0_6 = arith.constant 0 : index
    %c0_7 = arith.constant 0 : index
    %4 = vector.load %arg3[%c0_5, %c0_6, %c0_7] : memref<1x8x8xf32, #tpu.memory_space<vmem>>, vector<1x8x8xf32>
    %5 = vector.shape_cast %4 : vector<1x8x8xf32> to vector<8x8xf32>
    %c0_8 = arith.constant 0 : index
    %c0_9 = arith.constant 0 : index
    %c0_10 = arith.constant 0 : index
    %6 = vector.load %arg4[%c0_8, %c0_9, %c0_10] : memref<1x8x16xf32, #tpu.memory_space<vmem>>, vector<1x8x16xf32>
    %7 = vector.shape_cast %6 : vector<1x8x16xf32> to vector<8x16xf32>
    %c0_11 = arith.constant 0 : index
    %c0_12 = arith.constant 0 : index
    %8 = vector.load %arg5[%c0_11, %c0_12] : memref<128x128xf32, #tpu.memory_space<vmem>>, vector<128x128xf32>
    %c0_13 = arith.constant 0 : index
    %c0_14 = arith.constant 0 : index
    %9 = vector.load %arg6[%c0_13, %c0_14] : memref<128x128xf32, #tpu.memory_space<vmem>>, vector<128x128xf32>
    %c0_15 = arith.constant 0 : index
    %c0_16 = arith.constant 0 : index
    %10 = vector.load %arg7[%c0_15, %c0_16] : memref<128x128xf32, #tpu.memory_space<vmem>>, vector<128x128xf32>
    %c0_17 = arith.constant 0 : index
    %c0_18 = arith.constant 0 : index
    %11 = vector.load %arg8[%c0_17, %c0_18] : memref<128x128xf32, #tpu.memory_space<vmem>>, vector<128x128xf32>
    %cst = arith.constant dense<0.000000e+00> : vector<8x128xf32>
    %12 = tpu.matmul %1, %8, %cst {dimension_numbers = #tpu.dot_dimension_numbers<[1], [0], [0], [1], [0, 0, 1, 1], [], []>} : vector<8x128xf32>, vector<128x128xf32>, vector<8x128xf32> -> vector<8x128xf32>
    %cst_19 = arith.constant dense<0.000000e+00> : vector<8x128xf32>
    %13 = tpu.matmul %1, %9, %cst_19 {dimension_numbers = #tpu.dot_dimension_numbers<[1], [0], [0], [1], [0, 0, 1, 1], [], []>} : vector<8x128xf32>, vector<128x128xf32>, vector<8x128xf32> -> vector<8x128xf32>
    %cst_20 = arith.constant dense<0.000000e+00> : vector<8x128xf32>
    %14 = tpu.matmul %1, %10, %cst_20 {dimension_numbers = #tpu.dot_dimension_numbers<[1], [0], [0], [1], [0, 0, 1, 1], [], []>} : vector<8x128xf32>, vector<128x128xf32>, vector<8x128xf32> -> vector<8x128xf32>
    %cst_21 = arith.constant 0.000000e+00 : f32
    %15 = vector.broadcast %cst_21 : f32 to vector<8x128xf32>
    %16 = vector.extract_strided_slice %12 {offsets = [0, 0], sizes = [8, 32], strides = [1, 1]} : vector<8x128xf32> to vector<8x32xf32>
    %17 = vector.extract_strided_slice %13 {offsets = [0, 0], sizes = [8, 32], strides = [1, 1]} : vector<8x128xf32> to vector<8x32xf32>
    %18 = vector.extract_strided_slice %14 {offsets = [0, 0], sizes = [8, 32], strides = [1, 1]} : vector<8x128xf32> to vector<8x32xf32>
    %cst_22 = arith.constant dense<0.000000e+00> : vector<8x8xf32>
    %19 = tpu.matmul %16, %17, %cst_22 {dimension_numbers = #tpu.dot_dimension_numbers<[1], [1], [0], [0], [0, 0, 1, 0], [], []>} : vector<8x32xf32>, vector<8x32xf32>, vector<8x8xf32> -> vector<8x8xf32>
    %cst_23 = arith.constant 0.176776692 : f32
    %20 = vector.broadcast %cst_23 : f32 to vector<8x8xf32>
    %21 = arith.mulf %19, %20 : vector<8x8xf32>
    %22 = arith.addf %21, %5 : vector<8x8xf32>
    %cst_24 = arith.constant dense<0xFF800000> : vector<8xf32>
    %23 = vector.multi_reduction <maximumf>, %22, %cst_24 [1] : vector<8x8xf32> to vector<8xf32>
    %24 = vector.shape_cast %23 : vector<8xf32> to vector<8x1xf32>
    %25 = vector.broadcast %24 : vector<8x1xf32> to vector<8x8xf32>
    %26 = arith.subf %22, %25 : vector<8x8xf32>
    %27 = math.exp %26 : vector<8x8xf32>
    %cst_25 = arith.constant dense<0.000000e+00> : vector<8xf32>
    %28 = vector.multi_reduction <add>, %27, %cst_25 [1] : vector<8x8xf32> to vector<8xf32>
    %29 = vector.shape_cast %28 : vector<8xf32> to vector<8x1xf32>
    %30 = vector.broadcast %29 : vector<8x1xf32> to vector<8x8xf32>
    %31 = arith.divf %27, %30 : vector<8x8xf32>
    %cst_26 = arith.constant dense<0.000000e+00> : vector<8x32xf32>
    %32 = tpu.matmul %31, %18, %cst_26 {dimension_numbers = #tpu.dot_dimension_numbers<[1], [0], [0], [1], [0, 0, 1, 1], [], []>} : vector<8x8xf32>, vector<8x32xf32>, vector<8x32xf32> -> vector<8x32xf32>
    %33 = vector.extract_strided_slice %11 {offsets = [0, 0], sizes = [32, 128], strides = [1, 1]} : vector<128x128xf32> to vector<32x128xf32>
    %cst_27 = arith.constant dense<0.000000e+00> : vector<8x128xf32>
    %34 = tpu.matmul %32, %33, %cst_27 {dimension_numbers = #tpu.dot_dimension_numbers<[1], [0], [0], [1], [0, 0, 1, 1], [], []>} : vector<8x32xf32>, vector<32x128xf32>, vector<8x128xf32> -> vector<8x128xf32>
    %35 = arith.addf %15, %34 : vector<8x128xf32>
    %36 = vector.extract_strided_slice %12 {offsets = [0, 32], sizes = [8, 32], strides = [1, 1]} : vector<8x128xf32> to vector<8x32xf32>
    %37 = vector.extract_strided_slice %13 {offsets = [0, 32], sizes = [8, 32], strides = [1, 1]} : vector<8x128xf32> to vector<8x32xf32>
    %38 = vector.extract_strided_slice %14 {offsets = [0, 32], sizes = [8, 32], strides = [1, 1]} : vector<8x128xf32> to vector<8x32xf32>
    %cst_28 = arith.constant dense<0.000000e+00> : vector<8x8xf32>
    %39 = tpu.matmul %36, %37, %cst_28 {dimension_numbers = #tpu.dot_dimension_numbers<[1], [1], [0], [0], [0, 0, 1, 0], [], []>} : vector<8x32xf32>, vector<8x32xf32>, vector<8x8xf32> -> vector<8x8xf32>
    %cst_29 = arith.constant 0.176776692 : f32
    %40 = vector.broadcast %cst_29 : f32 to vector<8x8xf32>
    %41 = arith.mulf %39, %40 : vector<8x8xf32>
    %42 = arith.addf %41, %5 : vector<8x8xf32>
    %cst_30 = arith.constant dense<0xFF800000> : vector<8xf32>
    %43 = vector.multi_reduction <maximumf>, %42, %cst_30 [1] : vector<8x8xf32> to vector<8xf32>
    %44 = vector.shape_cast %43 : vector<8xf32> to vector<8x1xf32>
    %45 = vector.broadcast %44 : vector<8x1xf32> to vector<8x8xf32>
    %46 = arith.subf %42, %45 : vector<8x8xf32>
    %47 = math.exp %46 : vector<8x8xf32>
    %cst_31 = arith.constant dense<0.000000e+00> : vector<8xf32>
    %48 = vector.multi_reduction <add>, %47, %cst_31 [1] : vector<8x8xf32> to vector<8xf32>
    %49 = vector.shape_cast %48 : vector<8xf32> to vector<8x1xf32>
    %50 = vector.broadcast %49 : vector<8x1xf32> to vector<8x8xf32>
    %51 = arith.divf %47, %50 : vector<8x8xf32>
    %cst_32 = arith.constant dense<0.000000e+00> : vector<8x32xf32>
    %52 = tpu.matmul %51, %38, %cst_32 {dimension_numbers = #tpu.dot_dimension_numbers<[1], [0], [0], [1], [0, 0, 1, 1], [], []>} : vector<8x8xf32>, vector<8x32xf32>, vector<8x32xf32> -> vector<8x32xf32>
    %53 = vector.extract_strided_slice %11 {offsets = [32, 0], sizes = [32, 128], strides = [1, 1]} : vector<128x128xf32> to vector<32x128xf32>
    %cst_33 = arith.constant dense<0.000000e+00> : vector<8x128xf32>
    %54 = tpu.matmul %52, %53, %cst_33 {dimension_numbers = #tpu.dot_dimension_numbers<[1], [0], [0], [1], [0, 0, 1, 1], [], []>} : vector<8x32xf32>, vector<32x128xf32>, vector<8x128xf32> -> vector<8x128xf32>
    %55 = arith.addf %35, %54 : vector<8x128xf32>
    %56 = vector.extract_strided_slice %12 {offsets = [0, 64], sizes = [8, 32], strides = [1, 1]} : vector<8x128xf32> to vector<8x32xf32>
    %57 = vector.extract_strided_slice %13 {offsets = [0, 64], sizes = [8, 32], strides = [1, 1]} : vector<8x128xf32> to vector<8x32xf32>
    %58 = vector.extract_strided_slice %14 {offsets = [0, 64], sizes = [8, 32], strides = [1, 1]} : vector<8x128xf32> to vector<8x32xf32>
    %cst_34 = arith.constant dense<0.000000e+00> : vector<8x8xf32>
    %59 = tpu.matmul %56, %57, %cst_34 {dimension_numbers = #tpu.dot_dimension_numbers<[1], [1], [0], [0], [0, 0, 1, 0], [], []>} : vector<8x32xf32>, vector<8x32xf32>, vector<8x8xf32> -> vector<8x8xf32>
    %cst_35 = arith.constant 0.176776692 : f32
    %60 = vector.broadcast %cst_35 : f32 to vector<8x8xf32>
    %61 = arith.mulf %59, %60 : vector<8x8xf32>
    %62 = arith.addf %61, %5 : vector<8x8xf32>
    %cst_36 = arith.constant dense<0xFF800000> : vector<8xf32>
    %63 = vector.multi_reduction <maximumf>, %62, %cst_36 [1] : vector<8x8xf32> to vector<8xf32>
    %64 = vector.shape_cast %63 : vector<8xf32> to vector<8x1xf32>
    %65 = vector.broadcast %64 : vector<8x1xf32> to vector<8x8xf32>
    %66 = arith.subf %62, %65 : vector<8x8xf32>
    %67 = math.exp %66 : vector<8x8xf32>
    %cst_37 = arith.constant dense<0.000000e+00> : vector<8xf32>
    %68 = vector.multi_reduction <add>, %67, %cst_37 [1] : vector<8x8xf32> to vector<8xf32>
    %69 = vector.shape_cast %68 : vector<8xf32> to vector<8x1xf32>
    %70 = vector.broadcast %69 : vector<8x1xf32> to vector<8x8xf32>
    %71 = arith.divf %67, %70 : vector<8x8xf32>
    %cst_38 = arith.constant dense<0.000000e+00> : vector<8x32xf32>
    %72 = tpu.matmul %71, %58, %cst_38 {dimension_numbers = #tpu.dot_dimension_numbers<[1], [0], [0], [1], [0, 0, 1, 1], [], []>} : vector<8x8xf32>, vector<8x32xf32>, vector<8x32xf32> -> vector<8x32xf32>
    %73 = vector.extract_strided_slice %11 {offsets = [64, 0], sizes = [32, 128], strides = [1, 1]} : vector<128x128xf32> to vector<32x128xf32>
    %cst_39 = arith.constant dense<0.000000e+00> : vector<8x128xf32>
    %74 = tpu.matmul %72, %73, %cst_39 {dimension_numbers = #tpu.dot_dimension_numbers<[1], [0], [0], [1], [0, 0, 1, 1], [], []>} : vector<8x32xf32>, vector<32x128xf32>, vector<8x128xf32> -> vector<8x128xf32>
    %75 = arith.addf %55, %74 : vector<8x128xf32>
    %76 = vector.extract_strided_slice %12 {offsets = [0, 96], sizes = [8, 32], strides = [1, 1]} : vector<8x128xf32> to vector<8x32xf32>
    %77 = vector.extract_strided_slice %13 {offsets = [0, 96], sizes = [8, 32], strides = [1, 1]} : vector<8x128xf32> to vector<8x32xf32>
    %78 = vector.extract_strided_slice %14 {offsets = [0, 96], sizes = [8, 32], strides = [1, 1]} : vector<8x128xf32> to vector<8x32xf32>
    %cst_40 = arith.constant dense<0.000000e+00> : vector<8x8xf32>
    %79 = tpu.matmul %76, %77, %cst_40 {dimension_numbers = #tpu.dot_dimension_numbers<[1], [1], [0], [0], [0, 0, 1, 0], [], []>} : vector<8x32xf32>, vector<8x32xf32>, vector<8x8xf32> -> vector<8x8xf32>
    %cst_41 = arith.constant 0.176776692 : f32
    %80 = vector.broadcast %cst_41 : f32 to vector<8x8xf32>
    %81 = arith.mulf %79, %80 : vector<8x8xf32>
    %82 = arith.addf %81, %5 : vector<8x8xf32>
    %cst_42 = arith.constant dense<0xFF800000> : vector<8xf32>
    %83 = vector.multi_reduction <maximumf>, %82, %cst_42 [1] : vector<8x8xf32> to vector<8xf32>
    %84 = vector.shape_cast %83 : vector<8xf32> to vector<8x1xf32>
    %85 = vector.broadcast %84 : vector<8x1xf32> to vector<8x8xf32>
    %86 = arith.subf %82, %85 : vector<8x8xf32>
    %87 = math.exp %86 : vector<8x8xf32>
    %cst_43 = arith.constant dense<0.000000e+00> : vector<8xf32>
    %88 = vector.multi_reduction <add>, %87, %cst_43 [1] : vector<8x8xf32> to vector<8xf32>
    %89 = vector.shape_cast %88 : vector<8xf32> to vector<8x1xf32>
    %90 = vector.broadcast %89 : vector<8x1xf32> to vector<8x8xf32>
    %91 = arith.divf %87, %90 : vector<8x8xf32>
    %cst_44 = arith.constant dense<0.000000e+00> : vector<8x32xf32>
    %92 = tpu.matmul %91, %78, %cst_44 {dimension_numbers = #tpu.dot_dimension_numbers<[1], [0], [0], [1], [0, 0, 1, 1], [], []>} : vector<8x8xf32>, vector<8x32xf32>, vector<8x32xf32> -> vector<8x32xf32>
    %93 = vector.extract_strided_slice %11 {offsets = [96, 0], sizes = [32, 128], strides = [1, 1]} : vector<128x128xf32> to vector<32x128xf32>
    %cst_45 = arith.constant dense<0.000000e+00> : vector<8x128xf32>
    %94 = tpu.matmul %92, %93, %cst_45 {dimension_numbers = #tpu.dot_dimension_numbers<[1], [0], [0], [1], [0, 0, 1, 1], [], []>} : vector<8x32xf32>, vector<32x128xf32>, vector<8x128xf32> -> vector<8x128xf32>
    %95 = arith.addf %75, %94 : vector<8x128xf32>
    %96 = arith.addf %1, %95 : vector<8x128xf32>
    %cst_46 = arith.constant dense<0.000000e+00> : vector<8xf32>
    %97 = vector.multi_reduction <add>, %96, %cst_46 [1] : vector<8x128xf32> to vector<8xf32>
    %98 = vector.shape_cast %97 : vector<8xf32> to vector<8x1xf32>
    %cst_47 = arith.constant 1.280000e+02 : f32
    %99 = vector.broadcast %cst_47 : f32 to vector<8x1xf32>
    %100 = arith.divf %98, %99 : vector<8x1xf32>
    %101 = vector.broadcast %100 : vector<8x1xf32> to vector<8x128xf32>
    %102 = arith.subf %96, %101 : vector<8x128xf32>
    %103 = arith.mulf %102, %102 : vector<8x128xf32>
    %cst_48 = arith.constant dense<0.000000e+00> : vector<8xf32>
    %104 = vector.multi_reduction <add>, %103, %cst_48 [1] : vector<8x128xf32> to vector<8xf32>
    %105 = vector.shape_cast %104 : vector<8xf32> to vector<8x1xf32>
    %cst_49 = arith.constant 1.280000e+02 : f32
    %106 = vector.broadcast %cst_49 : f32 to vector<8x1xf32>
    %107 = arith.divf %105, %106 : vector<8x1xf32>
    %cst_50 = arith.constant 9.99999974E-6 : f32
    %108 = vector.broadcast %cst_50 : f32 to vector<8x1xf32>
    %109 = arith.addf %107, %108 : vector<8x1xf32>
    %110 = math.rsqrt %109 : vector<8x1xf32>
    %111 = vector.broadcast %110 : vector<8x1xf32> to vector<8x128xf32>
    %112 = arith.mulf %102, %111 : vector<8x128xf32>
    %c0_51 = arith.constant 0 : index
    %c0_52 = arith.constant 0 : index
    %113 = vector.load %arg9[%c0_51, %c0_52] : memref<128x128xf32, #tpu.memory_space<vmem>>, vector<128x128xf32>
    %c0_53 = arith.constant 0 : index
    %c0_54 = arith.constant 0 : index
    %114 = vector.load %arg10[%c0_53, %c0_54] : memref<128x128xf32, #tpu.memory_space<vmem>>, vector<128x128xf32>
    %c0_55 = arith.constant 0 : index
    %c0_56 = arith.constant 0 : index
    %115 = vector.load %arg11[%c0_55, %c0_56] : memref<128x128xf32, #tpu.memory_space<vmem>>, vector<128x128xf32>
    %c0_57 = arith.constant 0 : index
    %c0_58 = arith.constant 0 : index
    %116 = vector.load %arg12[%c0_57, %c0_58] : memref<128x128xf32, #tpu.memory_space<vmem>>, vector<128x128xf32>
    %cst_59 = arith.constant dense<0.000000e+00> : vector<8x128xf32>
    %117 = tpu.matmul %112, %113, %cst_59 {dimension_numbers = #tpu.dot_dimension_numbers<[1], [0], [0], [1], [0, 0, 1, 1], [], []>} : vector<8x128xf32>, vector<128x128xf32>, vector<8x128xf32> -> vector<8x128xf32>
    %cst_60 = arith.constant dense<0.000000e+00> : vector<16x128xf32>
    %118 = tpu.matmul %3, %114, %cst_60 {dimension_numbers = #tpu.dot_dimension_numbers<[1], [0], [0], [1], [0, 0, 1, 1], [], []>} : vector<16x128xf32>, vector<128x128xf32>, vector<16x128xf32> -> vector<16x128xf32>
    %cst_61 = arith.constant dense<0.000000e+00> : vector<16x128xf32>
    %119 = tpu.matmul %3, %115, %cst_61 {dimension_numbers = #tpu.dot_dimension_numbers<[1], [0], [0], [1], [0, 0, 1, 1], [], []>} : vector<16x128xf32>, vector<128x128xf32>, vector<16x128xf32> -> vector<16x128xf32>
    %cst_62 = arith.constant 0.000000e+00 : f32
    %120 = vector.broadcast %cst_62 : f32 to vector<8x128xf32>
    %121 = vector.extract_strided_slice %117 {offsets = [0, 0], sizes = [8, 32], strides = [1, 1]} : vector<8x128xf32> to vector<8x32xf32>
    %122 = vector.extract_strided_slice %118 {offsets = [0, 0], sizes = [16, 32], strides = [1, 1]} : vector<16x128xf32> to vector<16x32xf32>
    %123 = vector.extract_strided_slice %119 {offsets = [0, 0], sizes = [16, 32], strides = [1, 1]} : vector<16x128xf32> to vector<16x32xf32>
    %cst_63 = arith.constant dense<0.000000e+00> : vector<8x16xf32>
    %124 = tpu.matmul %121, %122, %cst_63 {dimension_numbers = #tpu.dot_dimension_numbers<[1], [1], [0], [0], [0, 0, 1, 0], [], []>} : vector<8x32xf32>, vector<16x32xf32>, vector<8x16xf32> -> vector<8x16xf32>
    %cst_64 = arith.constant 0.176776692 : f32
    %125 = vector.broadcast %cst_64 : f32 to vector<8x16xf32>
    %126 = arith.mulf %124, %125 : vector<8x16xf32>
    %127 = arith.addf %126, %7 : vector<8x16xf32>
    %cst_65 = arith.constant dense<0xFF800000> : vector<8xf32>
    %128 = vector.multi_reduction <maximumf>, %127, %cst_65 [1] : vector<8x16xf32> to vector<8xf32>
    %129 = vector.shape_cast %128 : vector<8xf32> to vector<8x1xf32>
    %130 = vector.broadcast %129 : vector<8x1xf32> to vector<8x16xf32>
    %131 = arith.subf %127, %130 : vector<8x16xf32>
    %132 = math.exp %131 : vector<8x16xf32>
    %cst_66 = arith.constant dense<0.000000e+00> : vector<8xf32>
    %133 = vector.multi_reduction <add>, %132, %cst_66 [1] : vector<8x16xf32> to vector<8xf32>
    %134 = vector.shape_cast %133 : vector<8xf32> to vector<8x1xf32>
    %135 = vector.broadcast %134 : vector<8x1xf32> to vector<8x16xf32>
    %136 = arith.divf %132, %135 : vector<8x16xf32>
    %cst_67 = arith.constant dense<0.000000e+00> : vector<8x32xf32>
    %137 = tpu.matmul %136, %123, %cst_67 {dimension_numbers = #tpu.dot_dimension_numbers<[1], [0], [0], [1], [0, 0, 1, 1], [], []>} : vector<8x16xf32>, vector<16x32xf32>, vector<8x32xf32> -> vector<8x32xf32>
    %138 = vector.extract_strided_slice %116 {offsets = [0, 0], sizes = [32, 128], strides = [1, 1]} : vector<128x128xf32> to vector<32x128xf32>
    %cst_68 = arith.constant dense<0.000000e+00> : vector<8x128xf32>
    %139 = tpu.matmul %137, %138, %cst_68 {dimension_numbers = #tpu.dot_dimension_numbers<[1], [0], [0], [1], [0, 0, 1, 1], [], []>} : vector<8x32xf32>, vector<32x128xf32>, vector<8x128xf32> -> vector<8x128xf32>
    %140 = arith.addf %120, %139 : vector<8x128xf32>
    %141 = vector.extract_strided_slice %117 {offsets = [0, 32], sizes = [8, 32], strides = [1, 1]} : vector<8x128xf32> to vector<8x32xf32>
    %142 = vector.extract_strided_slice %118 {offsets = [0, 32], sizes = [16, 32], strides = [1, 1]} : vector<16x128xf32> to vector<16x32xf32>
    %143 = vector.extract_strided_slice %119 {offsets = [0, 32], sizes = [16, 32], strides = [1, 1]} : vector<16x128xf32> to vector<16x32xf32>
    %cst_69 = arith.constant dense<0.000000e+00> : vector<8x16xf32>
    %144 = tpu.matmul %141, %142, %cst_69 {dimension_numbers = #tpu.dot_dimension_numbers<[1], [1], [0], [0], [0, 0, 1, 0], [], []>} : vector<8x32xf32>, vector<16x32xf32>, vector<8x16xf32> -> vector<8x16xf32>
    %cst_70 = arith.constant 0.176776692 : f32
    %145 = vector.broadcast %cst_70 : f32 to vector<8x16xf32>
    %146 = arith.mulf %144, %145 : vector<8x16xf32>
    %147 = arith.addf %146, %7 : vector<8x16xf32>
    %cst_71 = arith.constant dense<0xFF800000> : vector<8xf32>
    %148 = vector.multi_reduction <maximumf>, %147, %cst_71 [1] : vector<8x16xf32> to vector<8xf32>
    %149 = vector.shape_cast %148 : vector<8xf32> to vector<8x1xf32>
    %150 = vector.broadcast %149 : vector<8x1xf32> to vector<8x16xf32>
    %151 = arith.subf %147, %150 : vector<8x16xf32>
    %152 = math.exp %151 : vector<8x16xf32>
    %cst_72 = arith.constant dense<0.000000e+00> : vector<8xf32>
    %153 = vector.multi_reduction <add>, %152, %cst_72 [1] : vector<8x16xf32> to vector<8xf32>
    %154 = vector.shape_cast %153 : vector<8xf32> to vector<8x1xf32>
    %155 = vector.broadcast %154 : vector<8x1xf32> to vector<8x16xf32>
    %156 = arith.divf %152, %155 : vector<8x16xf32>
    %cst_73 = arith.constant dense<0.000000e+00> : vector<8x32xf32>
    %157 = tpu.matmul %156, %143, %cst_73 {dimension_numbers = #tpu.dot_dimension_numbers<[1], [0], [0], [1], [0, 0, 1, 1], [], []>} : vector<8x16xf32>, vector<16x32xf32>, vector<8x32xf32> -> vector<8x32xf32>
    %158 = vector.extract_strided_slice %116 {offsets = [32, 0], sizes = [32, 128], strides = [1, 1]} : vector<128x128xf32> to vector<32x128xf32>
    %cst_74 = arith.constant dense<0.000000e+00> : vector<8x128xf32>
    %159 = tpu.matmul %157, %158, %cst_74 {dimension_numbers = #tpu.dot_dimension_numbers<[1], [0], [0], [1], [0, 0, 1, 1], [], []>} : vector<8x32xf32>, vector<32x128xf32>, vector<8x128xf32> -> vector<8x128xf32>
    %160 = arith.addf %140, %159 : vector<8x128xf32>
    %161 = vector.extract_strided_slice %117 {offsets = [0, 64], sizes = [8, 32], strides = [1, 1]} : vector<8x128xf32> to vector<8x32xf32>
    %162 = vector.extract_strided_slice %118 {offsets = [0, 64], sizes = [16, 32], strides = [1, 1]} : vector<16x128xf32> to vector<16x32xf32>
    %163 = vector.extract_strided_slice %119 {offsets = [0, 64], sizes = [16, 32], strides = [1, 1]} : vector<16x128xf32> to vector<16x32xf32>
    %cst_75 = arith.constant dense<0.000000e+00> : vector<8x16xf32>
    %164 = tpu.matmul %161, %162, %cst_75 {dimension_numbers = #tpu.dot_dimension_numbers<[1], [1], [0], [0], [0, 0, 1, 0], [], []>} : vector<8x32xf32>, vector<16x32xf32>, vector<8x16xf32> -> vector<8x16xf32>
    %cst_76 = arith.constant 0.176776692 : f32
    %165 = vector.broadcast %cst_76 : f32 to vector<8x16xf32>
    %166 = arith.mulf %164, %165 : vector<8x16xf32>
    %167 = arith.addf %166, %7 : vector<8x16xf32>
    %cst_77 = arith.constant dense<0xFF800000> : vector<8xf32>
    %168 = vector.multi_reduction <maximumf>, %167, %cst_77 [1] : vector<8x16xf32> to vector<8xf32>
    %169 = vector.shape_cast %168 : vector<8xf32> to vector<8x1xf32>
    %170 = vector.broadcast %169 : vector<8x1xf32> to vector<8x16xf32>
    %171 = arith.subf %167, %170 : vector<8x16xf32>
    %172 = math.exp %171 : vector<8x16xf32>
    %cst_78 = arith.constant dense<0.000000e+00> : vector<8xf32>
    %173 = vector.multi_reduction <add>, %172, %cst_78 [1] : vector<8x16xf32> to vector<8xf32>
    %174 = vector.shape_cast %173 : vector<8xf32> to vector<8x1xf32>
    %175 = vector.broadcast %174 : vector<8x1xf32> to vector<8x16xf32>
    %176 = arith.divf %172, %175 : vector<8x16xf32>
    %cst_79 = arith.constant dense<0.000000e+00> : vector<8x32xf32>
    %177 = tpu.matmul %176, %163, %cst_79 {dimension_numbers = #tpu.dot_dimension_numbers<[1], [0], [0], [1], [0, 0, 1, 1], [], []>} : vector<8x16xf32>, vector<16x32xf32>, vector<8x32xf32> -> vector<8x32xf32>
    %178 = vector.extract_strided_slice %116 {offsets = [64, 0], sizes = [32, 128], strides = [1, 1]} : vector<128x128xf32> to vector<32x128xf32>
    %cst_80 = arith.constant dense<0.000000e+00> : vector<8x128xf32>
    %179 = tpu.matmul %177, %178, %cst_80 {dimension_numbers = #tpu.dot_dimension_numbers<[1], [0], [0], [1], [0, 0, 1, 1], [], []>} : vector<8x32xf32>, vector<32x128xf32>, vector<8x128xf32> -> vector<8x128xf32>
    %180 = arith.addf %160, %179 : vector<8x128xf32>
    %181 = vector.extract_strided_slice %117 {offsets = [0, 96], sizes = [8, 32], strides = [1, 1]} : vector<8x128xf32> to vector<8x32xf32>
    %182 = vector.extract_strided_slice %118 {offsets = [0, 96], sizes = [16, 32], strides = [1, 1]} : vector<16x128xf32> to vector<16x32xf32>
    %183 = vector.extract_strided_slice %119 {offsets = [0, 96], sizes = [16, 32], strides = [1, 1]} : vector<16x128xf32> to vector<16x32xf32>
    %cst_81 = arith.constant dense<0.000000e+00> : vector<8x16xf32>
    %184 = tpu.matmul %181, %182, %cst_81 {dimension_numbers = #tpu.dot_dimension_numbers<[1], [1], [0], [0], [0, 0, 1, 0], [], []>} : vector<8x32xf32>, vector<16x32xf32>, vector<8x16xf32> -> vector<8x16xf32>
    %cst_82 = arith.constant 0.176776692 : f32
    %185 = vector.broadcast %cst_82 : f32 to vector<8x16xf32>
    %186 = arith.mulf %184, %185 : vector<8x16xf32>
    %187 = arith.addf %186, %7 : vector<8x16xf32>
    %cst_83 = arith.constant dense<0xFF800000> : vector<8xf32>
    %188 = vector.multi_reduction <maximumf>, %187, %cst_83 [1] : vector<8x16xf32> to vector<8xf32>
    %189 = vector.shape_cast %188 : vector<8xf32> to vector<8x1xf32>
    %190 = vector.broadcast %189 : vector<8x1xf32> to vector<8x16xf32>
    %191 = arith.subf %187, %190 : vector<8x16xf32>
    %192 = math.exp %191 : vector<8x16xf32>
    %cst_84 = arith.constant dense<0.000000e+00> : vector<8xf32>
    %193 = vector.multi_reduction <add>, %192, %cst_84 [1] : vector<8x16xf32> to vector<8xf32>
    %194 = vector.shape_cast %193 : vector<8xf32> to vector<8x1xf32>
    %195 = vector.broadcast %194 : vector<8x1xf32> to vector<8x16xf32>
    %196 = arith.divf %192, %195 : vector<8x16xf32>
    %cst_85 = arith.constant dense<0.000000e+00> : vector<8x32xf32>
    %197 = tpu.matmul %196, %183, %cst_85 {dimension_numbers = #tpu.dot_dimension_numbers<[1], [0], [0], [1], [0, 0, 1, 1], [], []>} : vector<8x16xf32>, vector<16x32xf32>, vector<8x32xf32> -> vector<8x32xf32>
    %198 = vector.extract_strided_slice %116 {offsets = [96, 0], sizes = [32, 128], strides = [1, 1]} : vector<128x128xf32> to vector<32x128xf32>
    %cst_86 = arith.constant dense<0.000000e+00> : vector<8x128xf32>
    %199 = tpu.matmul %197, %198, %cst_86 {dimension_numbers = #tpu.dot_dimension_numbers<[1], [0], [0], [1], [0, 0, 1, 1], [], []>} : vector<8x32xf32>, vector<32x128xf32>, vector<8x128xf32> -> vector<8x128xf32>
    %200 = arith.addf %180, %199 : vector<8x128xf32>
    %201 = arith.addf %112, %200 : vector<8x128xf32>
    %cst_87 = arith.constant dense<0.000000e+00> : vector<8xf32>
    %202 = vector.multi_reduction <add>, %201, %cst_87 [1] : vector<8x128xf32> to vector<8xf32>
    %203 = vector.shape_cast %202 : vector<8xf32> to vector<8x1xf32>
    %cst_88 = arith.constant 1.280000e+02 : f32
    %204 = vector.broadcast %cst_88 : f32 to vector<8x1xf32>
    %205 = arith.divf %203, %204 : vector<8x1xf32>
    %206 = vector.broadcast %205 : vector<8x1xf32> to vector<8x128xf32>
    %207 = arith.subf %201, %206 : vector<8x128xf32>
    %208 = arith.mulf %207, %207 : vector<8x128xf32>
    %cst_89 = arith.constant dense<0.000000e+00> : vector<8xf32>
    %209 = vector.multi_reduction <add>, %208, %cst_89 [1] : vector<8x128xf32> to vector<8xf32>
    %210 = vector.shape_cast %209 : vector<8xf32> to vector<8x1xf32>
    %cst_90 = arith.constant 1.280000e+02 : f32
    %211 = vector.broadcast %cst_90 : f32 to vector<8x1xf32>
    %212 = arith.divf %210, %211 : vector<8x1xf32>
    %cst_91 = arith.constant 9.99999974E-6 : f32
    %213 = vector.broadcast %cst_91 : f32 to vector<8x1xf32>
    %214 = arith.addf %212, %213 : vector<8x1xf32>
    %215 = math.rsqrt %214 : vector<8x1xf32>
    %216 = vector.broadcast %215 : vector<8x1xf32> to vector<8x128xf32>
    %217 = arith.mulf %207, %216 : vector<8x128xf32>
    %c0_92 = arith.constant 0 : index
    %c0_93 = arith.constant 0 : index
    %218 = vector.load %arg13[%c0_92, %c0_93] : memref<128x256xf32, #tpu.memory_space<vmem>>, vector<128x256xf32>
    %cst_94 = arith.constant dense<0.000000e+00> : vector<8x256xf32>
    %219 = tpu.matmul %217, %218, %cst_94 {dimension_numbers = #tpu.dot_dimension_numbers<[1], [0], [0], [1], [0, 0, 1, 1], [], []>} : vector<8x128xf32>, vector<128x256xf32>, vector<8x256xf32> -> vector<8x256xf32>
    %cst_95 = arith.constant 0.000000e+00 : f32
    %220 = vector.broadcast %cst_95 : f32 to vector<8x256xf32>
    %221 = arith.maximumf %219, %220 : vector<8x256xf32>
    %c0_96 = arith.constant 0 : index
    %c0_97 = arith.constant 0 : index
    %222 = vector.load %arg14[%c0_96, %c0_97] : memref<256x128xf32, #tpu.memory_space<vmem>>, vector<256x128xf32>
    %cst_98 = arith.constant dense<0.000000e+00> : vector<8x128xf32>
    %223 = tpu.matmul %221, %222, %cst_98 {dimension_numbers = #tpu.dot_dimension_numbers<[1], [0], [0], [1], [0, 0, 1, 1], [], []>} : vector<8x256xf32>, vector<256x128xf32>, vector<8x128xf32> -> vector<8x128xf32>
    %224 = arith.addf %217, %223 : vector<8x128xf32>
    %cst_99 = arith.constant dense<0.000000e+00> : vector<8xf32>
    %225 = vector.multi_reduction <add>, %224, %cst_99 [1] : vector<8x128xf32> to vector<8xf32>
    %226 = vector.shape_cast %225 : vector<8xf32> to vector<8x1xf32>
    %cst_100 = arith.constant 1.280000e+02 : f32
    %227 = vector.broadcast %cst_100 : f32 to vector<8x1xf32>
    %228 = arith.divf %226, %227 : vector<8x1xf32>
    %229 = vector.broadcast %228 : vector<8x1xf32> to vector<8x128xf32>
    %230 = arith.subf %224, %229 : vector<8x128xf32>
    %231 = arith.mulf %230, %230 : vector<8x128xf32>
    %cst_101 = arith.constant dense<0.000000e+00> : vector<8xf32>
    %232 = vector.multi_reduction <add>, %231, %cst_101 [1] : vector<8x128xf32> to vector<8xf32>
    %233 = vector.shape_cast %232 : vector<8xf32> to vector<8x1xf32>
    %cst_102 = arith.constant 1.280000e+02 : f32
    %234 = vector.broadcast %cst_102 : f32 to vector<8x1xf32>
    %235 = arith.divf %233, %234 : vector<8x1xf32>
    %cst_103 = arith.constant 9.99999974E-6 : f32
    %236 = vector.broadcast %cst_103 : f32 to vector<8x1xf32>
    %237 = arith.addf %235, %236 : vector<8x1xf32>
    %238 = math.rsqrt %237 : vector<8x1xf32>
    %239 = vector.broadcast %238 : vector<8x1xf32> to vector<8x128xf32>
    %240 = arith.mulf %230, %239 : vector<8x128xf32>
    %c0_104 = arith.constant 0 : index
    %c0_105 = arith.constant 0 : index
    %c0_106 = arith.constant 0 : index
    %241 = vector.load %arg15[%c0_104, %c0_105, %c0_106] : memref<1x8x128xf32, #tpu.memory_space<vmem>>, vector<1x8x128xf32>
    %242 = vector.shape_cast %241 : vector<1x8x128xf32> to vector<8x128xf32>
    %243 = vector.shape_cast %240 : vector<8x128xf32> to vector<1x8x128xf32>
    tpu.vector_store %arg15[%c0_104, %c0_105, %c0_106], %243 {strides = array<i32>} : memref<1x8x128xf32, #tpu.memory_space<vmem>>, vector<1x8x128xf32>,
    return
  }
  func.func @transform_0(%arg0: i32) -> (i32, i32, i32) {
    %c0_i32 = arith.constant 0 : i32
    %c0_i32_0 = arith.constant 0 : i32
    %c0_i32_1 = arith.constant 0 : i32
    return %arg0, %c0_i32, %c0_i32_0 : i32, i32, i32
  }
  func.func @transform_1(%arg0: i32) -> (i32, i32, i32) {
    %c0_i32 = arith.constant 0 : i32
    %c0_i32_0 = arith.constant 0 : i32
    %c0_i32_1 = arith.constant 0 : i32
    return %arg0, %c0_i32, %c0_i32_0 : i32, i32, i32
  }
  func.func @transform_2(%arg0: i32) -> (i32, i32, i32) {
    %c0_i32 = arith.constant 0 : i32
    %c0_i32_0 = arith.constant 0 : i32
    %c0_i32_1 = arith.constant 0 : i32
    return %arg0, %c0_i32, %c0_i32_0 : i32, i32, i32
  }
  func.func @transform_3(%arg0: i32) -> (i32, i32, i32) {
    %c0_i32 = arith.constant 0 : i32
    %c0_i32_0 = arith.constant 0 : i32
    %c0_i32_1 = arith.constant 0 : i32
    return %arg0, %c0_i32, %c0_i32_0 : i32, i32, i32
  }
  func.func @transform_4(%arg0: i32) -> (i32, i32) {
    %c0_i32 = arith.constant 0 : i32
    %c0_i32_0 = arith.constant 0 : i32
    %c0_i32_1 = arith.constant 0 : i32
    return %c0_i32, %c0_i32_0 : i32, i32
  }
  func.func @transform_5(%arg0: i32) -> (i32, i32) {
    %c0_i32 = arith.constant 0 : i32
    %c0_i32_0 = arith.constant 0 : i32
    %c0_i32_1 = arith.constant 0 : i32
    return %c0_i32, %c0_i32_0 : i32, i32
  }
  func.func @transform_6(%arg0: i32) -> (i32, i32) {
    %c0_i32 = arith.constant 0 : i32
    %c0_i32_0 = arith.constant 0 : i32
    %c0_i32_1 = arith.constant 0 : i32
    return %c0_i32, %c0_i32_0 : i32, i32
  }
  func.func @transform_7(%arg0: i32) -> (i32, i32) {
    %c0_i32 = arith.constant 0 : i32
    %c0_i32_0 = arith.constant 0 : i32
    %c0_i32_1 = arith.constant 0 : i32
    return %c0_i32, %c0_i32_0 : i32, i32
  }
  func.func @transform_8(%arg0: i32) -> (i32, i32) {
    %c0_i32 = arith.constant 0 : i32
    %c0_i32_0 = arith.constant 0 : i32
    %c0_i32_1 = arith.constant 0 : i32
    return %c0_i32, %c0_i32_0 : i32, i32
  }
  func.func @transform_9(%arg0: i32) -> (i32, i32) {
    %c0_i32 = arith.constant 0 : i32
    %c0_i32_0 = arith.constant 0 : i32
    %c0_i32_1 = arith.constant 0 : i32
    return %c0_i32, %c0_i32_0 : i32, i32
  }
  func.func @transform_10(%arg0: i32) -> (i32, i32) {
    %c0_i32 = arith.constant 0 : i32
    %c0_i32_0 = arith.constant 0 : i32
    %c0_i32_1 = arith.constant 0 : i32
    return %c0_i32, %c0_i32_0 : i32, i32
  }
  func.func @transform_11(%arg0: i32) -> (i32, i32) {
    %c0_i32 = arith.constant 0 : i32
    %c0_i32_0 = arith.constant 0 : i32
    %c0_i32_1 = arith.constant 0 : i32
    return %c0_i32, %c0_i32_0 : i32, i32
  }
  func.func @transform_12(%arg0: i32) -> (i32, i32) {
    %c0_i32 = arith.constant 0 : i32
    %c0_i32_0 = arith.constant 0 : i32
    %c0_i32_1 = arith.constant 0 : i32
    return %c0_i32, %c0_i32_0 : i32, i32
  }
  func.func @transform_13(%arg0: i32) -> (i32, i32) {
    %c0_i32 = arith.constant 0 : i32
    %c0_i32_0 = arith.constant 0 : i32
    %c0_i32_1 = arith.constant 0 : i32
    return %c0_i32, %c0_i32_0 : i32, i32
  }
  func.func @transform_14(%arg0: i32) -> (i32, i32, i32) {
    %c0_i32 = arith.constant 0 : i32
    %c0_i32_0 = arith.constant 0 : i32
    %c0_i32_1 = arith.constant 0 : i32
    return %arg0, %c0_i32, %c0_i32_0 : i32, i32, i32
  }
}

</mosaic_0001>

<bundles_post_ra>
// kernel: tpu_custom_call.1
= control target key start
LH: loop header
LB: loop body
LE: loop exit
PB: predicated region body
PF: predicated region fallthrough
CT: control target
= control target key end

     0   :  { %s3746_s0 = inlined_call_operand.hbm [shape: f32[2,8,128], index: 0, kind: input, shape index: {}]   ;;  %s3747_s1 = inlined_call_operand.hbm [shape: f32[2,16,128], index: 1, kind: input, shape index: {}]   ;;  %s3748_s2 = inlined_call_operand.hbm [shape: f32[2,8,8], index: 2, kind: input, shape index: {}]   ;;  %s3749_s3 = inlined_call_operand.hbm [shape: f32[2,8,16], index: 3, kind: input, shape index: {}]   ;;  %s3750_s4 = inlined_call_operand.hbm [shape: f32[128,128], index: 4, kind: input, shape index: {}]   ;;  %s3751_s5 = inlined_call_operand.hbm [shape: f32[128,128], index: 5, kind: input, shape index: {}]   ;;  %s3752_s6 = inlined_call_operand.hbm [shape: f32[128,128], index: 6, kind: input, shape index: {}]   ;;  %s3753_s7 = inlined_call_operand.hbm [shape: f32[128,128], index: 7, kind: input, shape index: {}]   ;;  %s3754_s8 = inlined_call_operand.hbm [shape: f32[128,128], index: 8, kind: input, shape index: {}]   ;;  %s3755_s9 = inlined_call_operand.hbm [shape: f32[128,128], index: 9, kind: input, shape index: {}]   ;;  %s3756_s10 = inlined_call_operand.hbm [shape: f32[128,128], index: 10, kind: input, shape index: {}]   ;;  %s3757_s11 = inlined_call_operand.hbm [shape: f32[128,128], index: 11, kind: input, shape index: {}]   ;;  %s3758_s12 = inlined_call_operand.hbm [shape: f32[128,256], index: 12, kind: input, shape index: {}]   ;;  %s3759_s13 = inlined_call_operand.hbm [shape: f32[256,128], index: 13, kind: input, shape index: {}]   ;;  %s3760_s14 = inlined_call_operand.hbm [shape: f32[2,8,128], index: 14, kind: output, shape index: {}]  }
   0x1   :  { %3775 = sst [smem:[#allocation43_spill]] %s3747_s1 }
   0x2   :  { %3776 = sst [smem:[#allocation44_spill]] %s3750_s4 }
   0x3   :  { %3777 = sst [smem:[#allocation45_spill]] %s3751_s5 }
   0x4   :  { %3778 = sst [smem:[#allocation46_spill]] %s3753_s7 }
   0x5   :  { %3779 = sst [smem:[#allocation47_spill]] %s3755_s9 }
   0x6   :  { %3780 = sst [smem:[#allocation48_spill]] %s3757_s11 }
   0x7   :  { %3781 = sst [smem:[#allocation49_spill]] %s3760_s14 }
   0x8   :  { %19 = vsyncpa [#allocation3], 0 }
   0x9   :  { %21 = vsyncpa [#allocation3 + $0x1], 0 }
   0xa   :  { %22 = vsyncpa [#allocation6], 0 }
   0xb   :  { %24 = vsyncpa [#allocation6 + $0x1], 0 }
   0xc   :  { %25 = vsyncpa [#allocation9], 0 }
   0xd   :  { %27 = vsyncpa [#allocation9 + $0x1], 0 }
   0xe   :  { %28 = vsyncpa [#allocation12], 0 }
   0xf   :  { %29 = vsyncpa [#allocation15], 0 }
  0x10   :  { %30 = vsyncpa [#allocation18], 0 }
  0x11   :  { %31 = vsyncpa [#allocation21], 0 }
  0x12   :  { %32 = vsyncpa [#allocation24], 0 }
  0x13   :  { %33 = vsyncpa [#allocation4], 0 }
  0x14   :  { %35 = vsyncpa [#allocation4 + $0x1], 0  ;;  %s3255_s29 = smov 0   ;;  %s3257_s30 = smov 0  }
  0x15   :  { %s3259_s15 = smov 0   ;;  %s3261_s16 = smov 0  }
  0x16 LB: > { %3782 = sst [smem:[#allocation36_spill]] %s3148_s29  ;;  %s3279_s20 = sadd.s32 4294967295, %s3160_s16   ;;  %s3160_s16 = sphi %s3261_s16, %s3823_s16   ;;  %s3156_s15 = sphi %s3259_s15, %s3825_s15   ;;  %s3152_s30 = sphi %s3257_s30, %s3827_s30   ;;  %s3148_s29 = sphi %s3255_s29, %s3826_s29  }
  0x17   : > { %3783 = sst [smem:[#allocation37_spill]] %s3156_s15  ;;  %p2339_p0 = scmp.ge.s32.totalorder %s3160_s16, 1 }
  0x18   : > { %s3784_s4 = sld [smem:[#allocation44_spill]]  ;;  %p3774_p1 = scmp.eq.s32.totalorder %s3279_s20, 0 }
  0x19   : > { %p386_p2 = scmp.lt.s32.totalorder %s3160_s16, 3  ;;  %s3162_s22 = smov [#allocation10]  }
  0x1a   : > { %s399_s23 = sshll.u32 %s3162_s22, 4  ;;  %s3787_s5 = sld [smem:[#allocation45_spill]]  ;;  %s400_s23 = int_to_ptr.vmem [resolvable:$true] %s399_s23 }
  0x1b   : > { %p3284_p3 = pnand %p2339_p0, %p386_p2  ;;  %s3789_s7 = sld [smem:[#allocation46_spill]] }
  0x1c   : > { %s3163_s22 = smov [#allocation11]   ;;  %s3763_s14 = smov 128  }
  0x1d   : > { %s3785_s21 = scalar_select %p3284_p3, 1, 0 }
  0x1e   : > { %s397_s19 = sshll.u32 %s3784_s4, 4  ;;  %p2467_p4 = pneg %p3284_p3  ;;  %s398_s19 = int_to_ptr.hbm [resolvable:$true] %s397_s19 }
  0x1f   : > { %3786 = sst [smem:[#allocation38_spill]] %s3785_s21  ;;  %s413_s4 = sshll.u32 %s3163_s22, 4  ;;  %s414_s4 = int_to_ptr.vmem [resolvable:$true] %s413_s4 }
  0x20   : > { %s411_s26 = sshll.u32 %s3787_s5, 4  ;;  %p3296_p6 = pnand %p2467_p4, %p3774_p1  ;;  %s412_s26 = int_to_ptr.hbm [resolvable:$true] %s411_s26 }
  0x21   : > { %s439_s18 = sshll.u32 %s3789_s7, 4  ;;  %s3765_s21 = smov 8   ;;  %s440_s18 = int_to_ptr.hbm [resolvable:$true] %s439_s18 }
  0x22   : > { %2470 = dma.hbm_to_vmem [thread:$0]  (!%p3296_p6), %s398_s19, 2048, %s400_s23, [#allocation9], %s3763_s14, %s3763_s14, %s3765_s21  }
  0x23   : > { %2473 = dma.hbm_to_vmem [thread:$0]  (!%p3296_p6), %s412_s26, 2048, %s414_s4, [#allocation12], %s3763_s14, %s3763_s14, %s3765_s21  }
  0x24   : > { %s3790_s9 = sld [smem:[#allocation47_spill]]  ;;  %s3166_s17 = smov [#allocation14]  }
  0x25   : > { %s441_s22 = sshll.u32 %s3166_s17, 4  ;;  %s3167_s4 = smov [#allocation17]   ;;  %s442_s22 = int_to_ptr.vmem [resolvable:$true] %s441_s22 }
  0x26   : > { %2479 = dma.hbm_to_vmem [thread:$0]  (!%p3296_p6), %s440_s18, 2048, %s442_s22, [#allocation15], %s3763_s14, %s3763_s14, %s3765_s21  }
  0x27   : > { %s469_s19 = sshll.u32 %s3167_s4, 4  ;;  %s3791_s11 = sld [smem:[#allocation48_spill]]  ;;  %s470_s19 = int_to_ptr.vmem [resolvable:$true] %s469_s19 }
  0x28   : > { %s3168_s18 = smov [#allocation20]   ;;  %s2338_s17 = sadd.s32 4294967294, %s3160_s16  }
  0x29   : > { %s497_s25 = sshll.u32 %s3168_s18, 4  ;;  %s3336_s22 = sadd.s32 1, %s3160_s16   ;;  %s498_s25 = int_to_ptr.vmem [resolvable:$true] %s497_s25 }
  0x2a   : > { %s467_s28 = sshll.u32 %s3790_s9, 4  ;;  %3792 = sst [smem:[#allocation39_spill]] %s3336_s22  ;;  %s468_s28 = int_to_ptr.hbm [resolvable:$true] %s467_s28 }
  0x2b   : > { %2485 = dma.hbm_to_vmem [thread:$0]  (!%p3296_p6), %s468_s28, 2048, %s470_s19, [#allocation18], %s3763_s14, %s3763_s14, %s3765_s21  }
  0x2c   : > { %s48_s4 = sadd.s32 1, %s3156_s15  ;;  %s45_s23 = ssub.s32 %s3160_s16, %s3336_s22 }
  0x2d   : > { %s495_s24 = sshll.u32 %s3791_s11, 4  ;;  %p55_p7 = scmp.ne.s32.totalorder %s3156_s15, %s3152_s30  ;;  %s496_s24 = int_to_ptr.hbm [resolvable:$true] %s495_s24 }
  0x2e   : > { %2491 = dma.hbm_to_vmem [thread:$0]  (!%p3296_p6), %s496_s24, 2048, %s498_s25, [#allocation21], %s3763_s14, %s3763_s14, %s3765_s21  }
  0x2f   : > { %p46_p8 = scmp.eq.s32.totalorder %s45_s23, 0  ;;  %p56_p9 = scmp.eq.s32.totalorder %s3160_s16, 0 }
  0x30   : > { %p61_p10 = scmp.ne.s32.totalorder %s3152_s30, %s3148_s29  ;;  %p373_p11 = scmp.eq.s32.totalorder %s3279_s20, 1 }
  0x31   : > { %s3348_s28 = scalar_select %p46_p8, %s3156_s15, %s48_s4  }
  0x32   : > { %p57_p12 = por %p56_p9, %p55_p7  ;;  %p3352_p13 = por %p3774_p1, %p61_p10 }
  0x33   : > { %3793 = sst [smem:[#allocation40_spill]] %s3348_s28  ;;  %p3356_p0 = por %p373_p11, %p55_p7 }
  0x34   : > { %p379_p2 = scmp.eq.s32.totalorder %s2338_s17, 1  ;;  %p2525_p4 = scmp.lt.s32.totalorder %s3160_s16, 2 }
  0x35   : > { %s3795_s26 = scalar_select %p3356_p0, 1, 0 }
  0x36   : > { %s3362_s24 = sand.u32 1, %s3156_s15   ;;  %p3364_p5 = por %p379_p2, %p61_p10 }
  0x37   : > { %3796 = sst [smem:[#allocation41_spill]] %s3795_s26  ;;  %p3369_p8 = pnand %p2525_p4, %p57_p12 }
  0x38   : > { %s3797_s18 = scalar_select %p3364_p5, 1, 0 }
  0x39   : > { %s2353_s23 = sshll.u32 %s3362_s24, 4  ;;  %s2416_s14 = sshll.u32 %s3160_s16, 4 }
  0x3a   : > { %3798 = sst [smem:[#allocation42_spill]] %s3797_s18  ;;  %s562_s7 = scalar_lea.vmem [#allocation5], %s2353_s23 }
  0x3b   : > { %s3800_s1 = sld [smem:[#allocation43_spill]]  ;;  %s570_s9 = sshll.u32 %s562_s7, 4  ;;  %s571_s9 = int_to_ptr.vmem [resolvable:$true] %s570_s9 }
  0x3c   : > { %s425_s25 = sshll.u32 %s3752_s6, 4  ;;  %s3801_s22 = sand.u32 1, %s3160_s16   ;;  %s426_s25 = int_to_ptr.hbm [resolvable:$true] %s425_s25 }
  0x3d   : > { %s3383_s18 = scalar_lea.sflag [#allocation6], %s3801_s22  ;;  %p2796_p9 = pneg %p3369_p8 }
  0x41   : > { %s567_s17 = scalar_lea.hbm %s3800_s1, %s2416_s14  ;;  %s2799_s14 = scalar_lea.hbm %s3800_s1, 32 }
  0x42   : > { %s568_s11 = sshll.u32 %s567_s17, 4  ;;  %s569_s11 = int_to_ptr.hbm [resolvable:$true] %s568_s11 }
  0x43   : > { %s2792_s29 = sshra.s32 %s569_s11, 4  ;;  %s2793_s29 = int_to_ptr.hbm [resolvable:$true] %s2792_s29 }
  0x44   : > { %s2794_s26 = scalar_lea.hbm %s2793_s29, 16  ;;  %p2800_p12 = scmp.lt.s32.totalorder %s2793_s29, %s3800_s1 }
  0x45   : > { %p2795_p7 = scmp.ne.s32.totalorder %s2793_s29, %s2794_s26  ;;  %p2801_p2 = scmp.lt.s32.totalorder %s2799_s14, %s2794_s26 }
  0x47   : > { %p2797_p10 = pnand %p2796_p9, %p2795_p7  ;;  %p2802_p4 = por %p2801_p2, %p2800_p12 }
  0x49   : > { %p2798_p11 = pneg %p2797_p10 }
  0x4b   : > { %p2803_p1 = pnand %p2802_p4, %p2798_p11 }
  0x4d   : > { %2806 = shalt.err (!%p2803_p1)
}
  0x4e   : > { %s3802_s22 = smov 8   ;;  %s3803_s28 = smov 128  }
  0x4f   : > { %2504 = dma.hbm_to_vmem [thread:$0]  (!%p3369_p8), %s569_s11, 256, %s571_s9, %s3383_s18, %s3803_s28, %s3803_s28, %s3802_s22  }
  0x50   : > { %s3169_s23 = smov [#allocation13]   ;;  %s453_s29 = sshll.u32 %s3754_s8, 4  ;;  %s454_s29 = int_to_ptr.hbm [resolvable:$true] %s453_s29 }
  0x51   : > { %s427_s17 = sshll.u32 %s3169_s23, 4  ;;  %s481_s21 = sshll.u32 %s3756_s10, 4  ;;  %s428_s17 = int_to_ptr.vmem [resolvable:$true] %s427_s17  ;;  %s482_s21 = int_to_ptr.hbm [resolvable:$true] %s481_s21 }
  0x52   : > { %2476 = dma.hbm_to_vmem [thread:$0]  (!%p3296_p6), %s426_s25, 2048, %s428_s17, [#allocation12], %s3803_s28, %s3803_s28, %s3802_s22  }
  0x53   : > { %s3170_s9 = smov [#allocation16]   ;;  %s3171_s15 = smov [#allocation19]  }
  0x54   : > { %s455_s11 = sshll.u32 %s3170_s9, 4  ;;  %s483_s23 = sshll.u32 %s3171_s15, 4  ;;  %s456_s11 = int_to_ptr.vmem [resolvable:$true] %s455_s11  ;;  %s484_s23 = int_to_ptr.vmem [resolvable:$true] %s483_s23 }
  0x55   : > { %2482 = dma.hbm_to_vmem [thread:$0]  (!%p3296_p6), %s454_s29, 2048, %s456_s11, [#allocation15], %s3803_s28, %s3803_s28, %s3802_s22  }
  0x56   : > { %s509_s25 = sshll.u32 %s3758_s12, 4  ;;  %s3172_s17 = smov [#allocation22]   ;;  %s510_s25 = int_to_ptr.hbm [resolvable:$true] %s509_s25 }
  0x57   : > { %2488 = dma.hbm_to_vmem [thread:$0]  (!%p3296_p6), %s482_s21, 2048, %s484_s23, [#allocation18], %s3803_s28, %s3803_s28, %s3802_s22  }
  0x58   : > { %s511_s26 = sshll.u32 %s3172_s17, 4  ;;  %s523_s9 = sshll.u32 %s3759_s13, 4  ;;  %s512_s26 = int_to_ptr.vmem [resolvable:$true] %s511_s26  ;;  %s524_s9 = int_to_ptr.hbm [resolvable:$true] %s523_s9 }
  0x59   : > { %s3173_s11 = smov 256   ;;  %s3174_s15 = smov 16  }
  0x5a   : > { %2494 = dma.hbm_to_vmem [thread:$0]  (!%p3296_p6), %s510_s25, 4096, %s512_s26, [#allocation21], %s3173_s11, %s3173_s11, %s3174_s15  }
  0x5b   : > { %s3175_s5 = smov [#allocation23]   ;;  %s3432_s1 = sshll.u32 %s3362_s24, 3 }
  0x5c   : > { %s525_s7 = sshll.u32 %s3175_s5, 4  ;;  %s3440_s21 = sshll.u32 %s3160_s16, 3  ;;  %s526_s7 = int_to_ptr.vmem [resolvable:$true] %s525_s7 }
  0x5d   : > { %2497 = dma.hbm_to_vmem [thread:$0]  (!%p3296_p6), %s524_s9, 4096, %s526_s7, [#allocation24], %s3803_s28, %s3803_s28, %s3802_s22  }
  0x5e   : > { %s547_s25 = scalar_lea.hbm %s3746_s0, %s3440_s21  ;;  %s543_s26 = scalar_lea.vmem [#allocation2], %s3432_s1 }
  0x5f   : > { %s551_s29 = sshll.u32 %s543_s26, 4  ;;  %s549_s14 = sshll.u32 %s547_s25, 4  ;;  %s552_s29 = int_to_ptr.vmem [resolvable:$true] %s551_s29  ;;  %s550_s14 = int_to_ptr.hbm [resolvable:$true] %s549_s14 }
  0x60   : > { %s540_s11 = scalar_lea.sflag [#allocation3], %s3362_s24  ;;  %s2972_s15 = sshra.s32 %s550_s14, 4  ;;  %s2973_s15 = int_to_ptr.hbm [resolvable:$true] %s2972_s15 }
  0x61   : > { %s2974_s27 = scalar_lea.hbm %s2973_s15, 8  ;;  %s2979_s9 = scalar_lea.hbm %s3746_s0, 16 }
  0x62   : > { %p2975_p1 = scmp.ne.s32.totalorder %s2973_s15, %s2974_s27  ;;  %p2980_p10 = scmp.lt.s32.totalorder %s2973_s15, %s3746_s0 }
  0x63   : > { %p2981_p11 = scmp.lt.s32.totalorder %s2979_s9, %s2974_s27 }
  0x64   : > { %p2977_p6 = pnand %p2975_p1, %p2796_p9 }
  0x65   : > { %p2982_p12 = por %p2981_p11, %p2980_p10 }
  0x66   : > { %p2978_p7 = pneg %p2977_p6 }
  0x68   : > { %p2983_p2 = pnand %p2982_p12, %p2978_p7 }
  0x6a   : > { %2986 = shalt.err (!%p2983_p2)
}
  0x6b   : > { %2501 = dma.hbm_to_vmem [thread:$0]  (!%p3369_p8), %s550_s14, 128, %s552_s29, %s540_s11  }
  0x6c   : > { %s588_s17 = scalar_lea.hbm %s3748_s2, %s3440_s21  ;;  %s584_s25 = scalar_lea.vmem [#allocation7], %s3432_s1 }
  0x6d   : > { %s592_s26 = sshll.u32 %s584_s25, 4  ;;  %s590_s22 = sshll.u32 %s588_s17, 4  ;;  %s593_s26 = int_to_ptr.vmem [resolvable:$true] %s592_s26  ;;  %s591_s22 = int_to_ptr.hbm [resolvable:$true] %s590_s22 }
  0x6e   : > { %s3002_s15 = sshra.s32 %s591_s22, 4  ;;  %s3009_s29 = scalar_lea.hbm %s3748_s2, 16  ;;  %s3003_s15 = int_to_ptr.hbm [resolvable:$true] %s3002_s15 }
  0x6f   : > { %s3004_s27 = scalar_lea.hbm %s3003_s15, 8  ;;  %p3010_p7 = scmp.lt.s32.totalorder %s3003_s15, %s3748_s2 }
  0x70   : > { %p3005_p4 = scmp.ne.s32.totalorder %s3003_s15, %s3004_s27  ;;  %p3011_p10 = scmp.lt.s32.totalorder %s3009_s29, %s3004_s27 }
  0x72   : > { %p3007_p1 = pnand %p3005_p4, %p2796_p9  ;;  %p3012_p11 = por %p3011_p10, %p3010_p7 }
  0x74   : > { %p3008_p6 = pneg %p3007_p1 }
  0x76   : > { %p3013_p12 = pnand %p3012_p11, %p3008_p6 }
  0x78   : > { %3016 = shalt.err (!%p3013_p12)
}
  0x79   : > { %2507 = dma.hbm_to_vmem [thread:$0]  (!%p3369_p8), %s591_s22, 128, %s593_s26, %s3383_s18  }
  0x7a   : > { %s607_s24 = scalar_lea.hbm %s3749_s3, %s3440_s21  ;;  %s603_s17 = scalar_lea.vmem [#allocation8], %s3432_s1 }
  0x7b   : > { %s609_s23 = sshll.u32 %s607_s24, 4  ;;  %s611_s25 = sshll.u32 %s603_s17, 4  ;;  %s610_s23 = int_to_ptr.hbm [resolvable:$true] %s609_s23  ;;  %s612_s25 = int_to_ptr.vmem [resolvable:$true] %s611_s25 }
  0x7c   : > { %s3804_s15 = sand.u32 1, %s3160_s16   ;;  %s3032_s28 = sshra.s32 %s610_s23, 4  ;;  %s3033_s28 = int_to_ptr.hbm [resolvable:$true] %s3032_s28 }
  0x7d   : > { %s600_s27 = scalar_lea.sflag [#allocation9], %s3804_s15  ;;  %s3034_s9 = scalar_lea.hbm %s3033_s28, 8 }
  0x7e   : > { %p3035_p2 = scmp.ne.s32.totalorder %s3033_s28, %s3034_s9  ;;  %s3039_s22 = scalar_lea.hbm %s3749_s3, 16 }
  0x7f   : > { %p3040_p6 = scmp.lt.s32.totalorder %s3033_s28, %s3749_s3  ;;  %p3041_p7 = scmp.lt.s32.totalorder %s3039_s22, %s3034_s9 }
  0x80   : > { %p3037_p4 = pnand %p3035_p2, %p2796_p9 }
  0x81   : > { %p3042_p10 = por %p3041_p7, %p3040_p6 }
  0x82   : > { %p3038_p1 = pneg %p3037_p4 }
  0x84   : > { %p3043_p11 = pnand %p3042_p10, %p3038_p1 }
  0x86   : > { %3046 = shalt.err (!%p3043_p11)
}
  0x87   : > { %2510 = dma.hbm_to_vmem [thread:$0]  (!%p3369_p8), %s610_s23, 128, %s612_s25, %s600_s27  }
  0x88   : > { %620 = sbr.rel (%p3284_p3) target bundleno = 4330 (0x10ea), region = 76  ;;  %s3497_s14 = sand.u32 (!%p3284_p3), 1, %s3152_s30  }
  0x89   : > { %s3500_s11 = sshll.u32 (!%p3284_p3), %s3497_s14, 3  ;;  %s623_s5 = scalar_lea.sflag (!%p3284_p3), [#allocation3], %s3497_s14 }
  0x8a   : > { %s626_s7 = scalar_lea.vmem (!%p3284_p3), [#allocation2], %s3500_s11 }
  0x8d   : > { %3107 = dma.done.wait (%p3352_p13), %s623_s5, 128  }
  0x8e   : > { %3109 = vsyncadd (%p3352_p13), %s623_s5, 4294967168  ;;  %s632_s4 = sand.u32 1, %s3279_s20   ;;  %s2362_s24 = sshll.u32 %s3497_s14, 4 }
  0x8f   : > { %s633_s23 = scalar_lea.sflag [#allocation6], %s632_s4  ;;  %s3510_s17 = scalar_lea.vmem [#allocation5], %s2362_s24 }
  0x90   : > { %3111 = dma.done.wait (%p3352_p13), %s633_s23, 384  }
  0x91   : > { %3113 = vsyncadd (%p3352_p13), %s633_s23, 4294966912  ;;  %s646_s25 = scalar_lea.vmem [#allocation7], %s3500_s11  ;;  %s653_s15 = scalar_lea.sflag [#allocation9], %s632_s4 }
  0x92   : > { %s656_s27 = scalar_lea.vmem [#allocation8], %s3500_s11 }
  0x93   : > { %3115 = dma.done.wait (%p3352_p13), %s653_s15, 128  }
  0x94   : > { %3117 = vsyncadd (%p3352_p13), %s653_s15, 4294967168  ;;  %p3806_p3 = scmp.eq.s32.totalorder %s3279_s20, 0 }
  0x96   : > { %3119 = dma.done.wait (%p3806_p3), [#allocation9], 2048   ;;  %p3807_p8 = pmov %p3806_p3 }
  0x97   : > { %p3808_p9 = pmov %p3806_p3 }
  0x98   : > { %3121 = vsyncadd (%p3807_p8), [#allocation9], 4294965248 }
  0x99   : > { %3123 = dma.done.wait (%p3808_p9), [#allocation12], 4096   ;;  %p3809_p12 = pmov %p3806_p3 }
  0x9a   : > { %p3810_p2 = pmov %p3806_p3 }
  0x9b   : > { %3125 = vsyncadd (%p3809_p12), [#allocation12], 4294963200 }
  0x9c   : > { %3127 = dma.done.wait (%p3810_p2), [#allocation15], 4096   ;;  %p3811_p4 = pmov %p3810_p2 }
  0x9d   : > { %p3812_p13 = pmov %p3810_p2 }
  0x9e   : > { %3129 = vsyncadd (%p3811_p4), [#allocation15], 4294963200 }
  0x9f   : > { %3131 = dma.done.wait (%p3812_p13), [#allocation18], 4096   ;;  %p3813_p1 = pmov %p3810_p2 }
  0xa1   : > { %3133 = vsyncadd (%p3813_p1), [#allocation18], 4294963200  ;;  %p3814_p6 = pmov %p3813_p1 }
  0xa2   : > { %p3815_p7 = pmov %p3813_p1 }
  0xa3   : > { %3135 = dma.done.wait (%p3814_p6), [#allocation21], 6144  }
  0xa4   : > { %3137 = vsyncadd (%p3815_p7), [#allocation21], 4294961152  ;;  %p3816_p10 = pmov %p3813_p1 }
  0xa5   : > { %p3817_p11 = pmov %p3813_p1 }
  0xa6   : > { %3139 = dma.done.wait (%p3816_p10), [#allocation24], 4096  }
  0xa7   : > { %3141 = vsyncadd (%p3817_p11), [#allocation24], 4294963200  ;;  %v803_v0 = vld [vmem:[#allocation11 + $0x78] sm:$0xff]  ;;  %v802_v1 = vld [vmem:[#allocation11 + $0x70] sm:$0xff]  ;;  %vm896_vm0 = vcmask 261120   ;;  %s3176_s19 = smov 64  }
  0xa8   : > { %v787_v2 = vld [vmem:[#allocation10 + $0x78] sm:$0xff]  ;;  %856 = vmatpush.msra.mxu1 %v803_v0  ;;  %v786_v3 = vld [vmem:[#allocation10 + $0x70] sm:$0xff]  ;;  %v801_v4 = vld [vmem:[#allocation11 + $0x68] sm:$0xff]  ;;  %s3177_s28 = smov 96   ;;  %s3178_s9 = smov 32   ;;  %vm925_vm1 = vcmask 64512  }
  0xa9   : > { %836 = vmatpush.msra.mxu0 %v787_v2  ;;  %v785_v5 = vld [vmem:[#allocation10 + $0x68] sm:$0xff]  ;;  %v800_v6 = vld [vmem:[#allocation11 + $0x60] sm:$0xff]  ;;  %v799_v8 = vld [vmem:[#allocation11 + $0x58] sm:$0xff]  ;;  %s2413_s18 = sshll.u32 %s3279_s20, 3  ;;  %s3818_s21 = sld [smem:[#allocation49_spill]] }
  0xaa   : > { %857 = vmatpush.msra.mxu1 %v802_v1  ;;  %v784_v7 = vld [vmem:[#allocation10 + $0x60] sm:$0xff]  ;;  %v783_v9 = vld [vmem:[#allocation10 + $0x58] sm:$0xff]  ;;  %v798_v10 = vld [vmem:[#allocation11 + $0x50] sm:$0xff]  ;;  %s766_s5 = scalar_lea.vmem [#allocation25], %s3500_s11  ;;  %s2092_s20 = scalar_lea.sflag [#allocation4], %s3497_s14 }
  0xab   : > { %837 = vmatpush.msra.mxu0 %v786_v3  ;;  %v782_v11 = vld [vmem:[#allocation10 + $0x50] sm:$0xff]  ;;  %v797_v12 = vld [vmem:[#allocation11 + $0x48] sm:$0xff]  ;;  %v819_v14 = vld [vmem:[#allocation13 + $0x78] sm:$0xff] }
  0xac   : > { %858 = vmatpush.msra.mxu1 %v801_v4  ;;  %v781_v13 = vld [vmem:[#allocation10 + $0x48] sm:$0xff]  ;;  %v818_v15 = vld [vmem:[#allocation13 + $0x70] sm:$0xff]  ;;  %v796_v16 = vld [vmem:[#allocation11 + $0x40] sm:$0xff]  ;;  %876 = vmatpush.msra.mxu2 %v819_v14 }
  0xad   : > { %838 = vmatpush.msra.mxu0 %v785_v5  ;;  %v780_v17 = vld [vmem:[#allocation10 + $0x40] sm:$0xff]  ;;  %v817_v18 = vld [vmem:[#allocation13 + $0x68] sm:$0xff]  ;;  %v795_v19 = vld [vmem:[#allocation11 + $0x38] sm:$0xff] }
  0xae   : > { %859 = vmatpush.msra.mxu1 %v800_v6  ;;  %v779_v20 = vld [vmem:[#allocation10 + $0x38] sm:$0xff]  ;;  %877 = vmatpush.msra.mxu2 %v818_v15  ;;  %v816_v21 = vld [vmem:[#allocation13 + $0x60] sm:$0xff]  ;;  %v794_v22 = vld [vmem:[#allocation11 + $0x30] sm:$0xff] }
  0xaf   : > { %839 = vmatpush.msra.mxu0 %v784_v7  ;;  %v778_v23 = vld [vmem:[#allocation10 + $0x30] sm:$0xff]  ;;  %v815_v24 = vld [vmem:[#allocation13 + $0x58] sm:$0xff]  ;;  %v793_v25 = vld [vmem:[#allocation11 + $0x28] sm:$0xff]  ;;  %s2102_s29 = scalar_lea.hbm %s3818_s21, %s2413_s18  ;;  %s3082_s11 = scalar_lea.hbm %s3818_s21, 16 }
  0xb0   : > { %860 = vmatpush.msra.mxu1 %v799_v8  ;;  %878 = vmatpush.msra.mxu2 %v817_v18  ;;  %v777_v26 = vld [vmem:[#allocation10 + $0x28] sm:$0xff]  ;;  %v814_v27 = vld [vmem:[#allocation13 + $0x50] sm:$0xff]  ;;  %v792_v28 = vld [vmem:[#allocation11 + $0x20] sm:$0xff]  ;;  %s2106_s4 = sshll.u32 %s2102_s29, 4  ;;  %s2107_s4 = int_to_ptr.hbm [resolvable:$true] %s2106_s4 }
  0xb1   : > { %840 = vmatpush.msra.mxu0 %v783_v9  ;;  %v776_v29 = vld [vmem:[#allocation10 + $0x20] sm:$0xff]  ;;  %v813_v30 = vld [vmem:[#allocation13 + $0x48] sm:$0xff]  ;;  %v791_v31 = vld [vmem:[#allocation11 + $0x18] sm:$0xff]  ;;  %s3076_s24 = sshra.s32 %s2107_s4, 4  ;;  %s3077_s24 = int_to_ptr.hbm [resolvable:$true] %s3076_s24 }
  0xb2   : > { %861 = vmatpush.msra.mxu1 %v798_v10  ;;  %879 = vmatpush.msra.mxu2 %v816_v21  ;;  %v775_v32 = vld [vmem:[#allocation10 + $0x18] sm:$0xff]  ;;  %v812_v33 = vld [vmem:[#allocation13 + $0x40] sm:$0xff]  ;;  %v790_v34 = vld [vmem:[#allocation11 + $0x10] sm:$0xff]  ;;  %s3078_s23 = scalar_lea.hbm %s3077_s24, 8  ;;  %p3083_p12 = scmp.lt.s32.totalorder %s3077_s24, %s3818_s21 }
  0xb3   : > { %841 = vmatpush.msra.mxu0 %v782_v11  ;;  %v774_v35 = vld [vmem:[#allocation10 + $0x10] sm:$0xff]  ;;  %v811_v36 = vld [vmem:[#allocation13 + $0x38] sm:$0xff]  ;;  %v789_v37 = vld [vmem:[#allocation11 + $0x8] sm:$0xff]  ;;  %p3079_p3 = scmp.ne.s32.totalorder %s3077_s24, %s3078_s23  ;;  %p3084_p2 = scmp.lt.s32.totalorder %s3082_s11, %s3078_s23 }
  0xb4   : > { %862 = vmatpush.msra.mxu1 %v797_v12  ;;  %880 = vmatpush.msra.mxu2 %v815_v24  ;;  %v773_v38 = vld [vmem:[#allocation10 + $0x8] sm:$0xff]  ;;  %v810_v39 = vld [vmem:[#allocation13 + $0x30] sm:$0xff]  ;;  %v788_v40 = vld [vmem:[#allocation11] sm:$0xff] }
  0xb5   : > { %842 = vmatpush.msra.mxu0 %v781_v13  ;;  %v772_v41 = vld [vmem:[#allocation10] sm:$0xff]  ;;  %v3548_v42 = vld [vmem:[%s626_s7] sm:$0xff]  ;;  %v809_v43 = vld [vmem:[#allocation13 + $0x28] sm:$0xff]  ;;  %s2104_s7 = sshll.u32 %s766_s5, 4  ;;  %p3080_p8 = pnand %p3079_p3, %p3356_p0  ;;  %s2105_s7 = int_to_ptr.vmem [resolvable:$true] %s2104_s7 }
  0xb6   : > { %863 = vmatpush.msra.mxu1 %v796_v16  ;;  %881 = vmatpush.msra.mxu2 %v814_v27  ;;  %v808_v44 = vld [vmem:[#allocation13 + $0x20] sm:$0xff]  ;;  %v807_v45 = vld [vmem:[#allocation13 + $0x18] sm:$0xff]  ;;  %v806_v46 = vld [vmem:[#allocation13 + $0x10] sm:$0xff]  ;;  %p3085_p4 = por %p3084_p2, %p3083_p12 }
  0xb7   : > { %843 = vmatpush.msra.mxu0 %v780_v17  ;;  %v805_v47 = vld [vmem:[#allocation13 + $0x8] sm:$0xff]  ;;  %v804_v48 = vld [vmem:[#allocation13] sm:$0xff]  ;;  %v823_v5 = vld [vmem:[#allocation14 + $0x18] sm:$0xff]  ;;  %p3081_p9 = pneg %p3080_p8 }
  0xb8   : > { %864 = vmatpush.msra.mxu1 %v795_v19  ;;  %882 = vmatpush.msra.mxu2 %v813_v30  ;;  %v3568_v56 = vld [vmem:[%s646_s25] sm:$0xff]  ;;  %v822_v6 = vld [vmem:[#allocation14 + $0x10] sm:$0xff] }
  0xb9   : > { %844 = vmatpush.msra.mxu0 %v779_v20  ;;  %v821_v7 = vld [vmem:[#allocation14 + $0x8] sm:$0xff]  ;;  %v820_v8 = vld [vmem:[#allocation14] sm:$0xff]  ;;  %p3086_p13 = pnand %p3085_p4, %p3081_p9 }
  0xba   : > { %865 = vmatpush.msra.mxu1 %v794_v22  ;;  %883 = vmatpush.msra.mxu2 %v812_v33 }
  0xbb   : > { %845 = vmatpush.msra.mxu0 %v778_v23 }
  0xbc   : > { %866 = vmatpush.msra.mxu1 %v793_v25  ;;  %884 = vmatpush.msra.mxu2 %v811_v36 }
  0xbd   : > { %846 = vmatpush.msra.mxu0 %v777_v26 }
  0xbe   : > { %867 = vmatpush.msra.mxu1 %v792_v28  ;;  %885 = vmatpush.msra.mxu2 %v810_v39 }
  0xbf   : > { %847 = vmatpush.msra.mxu0 %v776_v29 }
  0xc0   : > { %868 = vmatpush.msra.mxu1 %v791_v31  ;;  %886 = vmatpush.msra.mxu2 %v809_v43 }
  0xc1   : > { %848 = vmatpush.msra.mxu0 %v775_v32 }
  0xc2   : > { %869 = vmatpush.msra.mxu1 %v790_v34  ;;  %887 = vmatpush.msra.mxu2 %v808_v44 }
  0xc3   : > { %849 = vmatpush.msra.mxu0 %v774_v35 }
  0xc4   : > { %870 = vmatpush.msra.mxu1 %v789_v37  ;;  %888 = vmatpush.msra.mxu2 %v807_v45 }
  0xc5   : > { %850 = vmatpush.msra.mxu0 %v773_v38 }
  0xc6   : > { %871 = vmatpush.msra.mxu1 %v788_v40  ;;  %889 = vmatpush.msra.mxu2 %v806_v46 }
  0xc7   : > { %851 = vmatpush.msra.mxu0 %v772_v41  ;;  %872 = vmatmul.f32.vlgmr.msra.gmra.mxu1 %v3548_v42 }
  0xc8   : > { %852 = vmatmul.f32.vlgmr.msra.gmra.mxu0 %v3548_v42  ;;  %890 = vmatpush.msra.mxu2 %v805_v47 }
  0xc9   : > { %1092 = vmatpush.msrb.mxu0 %v823_v5  ;;  %v824_v5 = vld [vmem:[#allocation14 + $0x20] sm:$0xff] }
  0xca   : > { %891 = vmatpush.msra.mxu2 %v804_v48 }
  0xcb   : > { %892 = vmatmul.f32.vlgmr.msra.gmra.mxu2 %v3548_v42  ;;  %1093 = vmatpush.msrb.mxu0 %v822_v6 }
  0xcd   : > { %1094 = vmatpush.msrb.mxu0 %v821_v7 }
  0xcf   : > { %1095 = vmatpush.msrb.mxu0 %v820_v8 }
 0x144   : > { %v873_v49 = vpop.f32.mrf.mxu1 }
 0x145   : > { %1102 = vrot.lane.b32.xlu2 %v873_v49, %s3176_s19  ;;  %975 = vrot.lane.b32.xlu1 %v873_v49, %s3177_s28  ;;  %v853_v50 = vpop.f32.mrf.mxu0 }
 0x146   : > { %2376 = vmatpush.xpose.msk.msra.mxu3 %vm896_vm0, %v873_v49 }
 0x149   : > { %2377 = vmatmul.msk.f32.vlgmr.msra.gmra.mxu3 %vm896_vm0, %v853_v50 }
 0x14d   : > { %1100 = vrot.lane.b32.xlu2 %v853_v50, %s3176_s19  ;;  %973 = vrot.lane.b32.xlu1 %v853_v50, %s3177_s28 }
 0x14e   : > { %v3560_v51 = vpop.f32.mrf.mxu2 }
 0x14f   : > { %968 = vmatpush.msrb.mxu3 %v3560_v51 }
 0x155   : > { %1204 = vrot.lane.b32.xlu1 %v853_v50, %s3178_s9 }
 0x19f   : > { %v1103_v52 = vpop.permute.xlu2 %1102 }
 0x1a0   : > { %2384 = vmatpush.xpose.msk.msrb.mxu1 %vm896_vm0, %v1103_v52 }
 0x1a7   : > { %v1101_v53 = vpop.permute.xlu2 %1100 }
 0x1a8   : > { %2385 = vmatmul.msk.f32.vlgmr.msrb.gmra.mxu1 %vm896_vm0, %v1101_v53 }
 0x1b7   : > { %v976_v54 = vpop.permute.xlu1 %975 }
 0x1b8   : > { %2379 = vmatpush.xpose.msk.msra.mxu3 %vm896_vm0, %v976_v54 }
 0x1bf   : > { %v974_v22 = vpop.permute.xlu1 %973 }
 0x1c7   : > { %v1205_v23 = vpop.permute.xlu1 %1204 }
 0x1cc   : > { %v920_v55 = vpop.f32.mrf.mxu3 }
 0x1cd   : > { %v923_v57 = vmul.f32 0.17677669, %v920_v55 }
 0x1cf   : > { %v924_v58 = vadd.f32 %v923_v57, %v3568_v56 }
 0x1d1   : > { %v926_v59 = vsel %vm925_vm1, %v924_v58, -inf }
 0x1d2   : > { %927 = vmax.xlane.f32.xlu0 %v926_v59 }
 0x225   : > { %v1125_v60 = vpop.f32.mrf.mxu1 }
 0x226   : > { %v1128_v61 = vmul.f32 0.17677669, %v1125_v60 }
 0x228   : > { %v1129_v62 = vadd.f32 %v1128_v61, %v3568_v56 }
 0x22a   : > { %v1130_v63 = vsel %vm925_vm1, %v1129_v62, -inf }
 0x22b   : > { %1131 = vmax.xlane.f32.xlu1 %v1130_v63 }
 0x245   : > { %v928_v0 = vpop.xlane.xlu0 %927 }
 0x246   : > { %v929_v1 = vsub.f32 %v924_v58, %v928_v0 }
 0x248   : > { %v930_v2 = vmul.f32 1.442695, %v929_v1 }
 0x24a   : > { %2602 = vpow2.f32 %v930_v2  ;;  %v827_v2 = vld [vmem:[#allocation14 + $0x38] sm:$0xff] }
 0x250   : > { %v2603_v3 = vpop.eup %2602 }
 0x251   : > { %v932_v4 = vsel %vm925_vm1, %v2603_v3, 0.0 }
 0x252   : > { %933 = vadd.xlane.f32.xlu0 %v932_v4  ;;  %v825_v4 = vld [vmem:[#allocation14 + $0x28] sm:$0xff] }
 0x266   : > { %1206 = vrot.lane.b32.xlu0 %v873_v49, %s3178_s9 }
 0x29e   : > { %v1132_v25 = vpop.xlane.xlu1 %1131 }
 0x29f   : > { %v1133_v26 = vsub.f32 %v1129_v62, %v1132_v25 }
 0x2a1   : > { %v1134_v27 = vmul.f32 1.442695, %v1133_v26 }
 0x2c5   : > { %v934_v9 = vpop.xlane.xlu0 %933 }
 0x2c6   : > { %2604 = vrcp.f32 %v934_v9  ;;  %v946_v13 = vand.u32 2147483648, %v934_v9  ;;  %v944_v15 = vand.u32 2147483647, %v934_v9  ;;  %vm940_vm3 = vweird.f32 %v934_v9 }
 0x2c7   : > { %2606 = vpow2.f32 %v1134_v27 }
 0x2c8   : > { %v947_v17 = vor.u32 1.1754944e-38, %v946_v13  ;;  %vm945_vm5 = vcmp.eq.f32.partialorder %v944_v15, 8.507059e+37 }
 0x2cc   : > { %v2605_v10 = vpop.eup %2604 }
 0x2cd   : > { %v936_v11 = vmul.f32 %v2605_v10, %v934_v9  ;;  %vm941_vm2 = vweird.f32 %v2605_v10  ;;  %v3583_v32 = vpop.eup %2606 }
 0x2ce   : > { %vm942_vm4 = vmor %vm940_vm3, %vm941_vm2  ;;  %v1136_v33 = vsel %vm925_vm1, %v3583_v32, 0.0 }
 0x2cf   : > { %v937_v12 = vsub.f32 1.0, %v936_v11 }
 0x2d1   : > { %v938_v14 = vmul.f32 %v2605_v10, %v937_v12 }
 0x2d3   : > { %v939_v16 = vadd.f32 %v2605_v10, %v938_v14 }
 0x2d5   : > { %v943_v18 = vsel %vm942_vm4, %v2605_v10, %v939_v16 }
 0x2d6   : > { %v948_v19 = vsel %vm945_vm5, %v947_v17, %v943_v18 }
 0x2d7   : > { %v949_v20 = vmul.f32 %v2603_v3, %v948_v19  ;;  %v826_v3 = vld [vmem:[#allocation14 + $0x30] sm:$0xff] }
 0x2d8   : > { %v1207_v21 = vpop.permute.xlu0 %1206 }
 0x2d9   : > { %2378 = vmatmul.msk.f32.vlgmr.msrb.gmra.mxu3 %vm925_vm1, %v949_v20  ;;  %2388 = vmatpush.xpose.msk.msra.mxu0 %vm896_vm0, %v1207_v21 }
 0x2e1   : > { %2380 = vmatmul.msk.f32.vlgmr.msra.gmra.mxu3 %vm896_vm0, %v974_v22 }
 0x35c   : > { %v970_v24 = vpop.f32.mrf.mxu3 }
 0x35d   : > { %2383 = vmatmul.msk.f32.vlgmr.msrb.gmra.mxu0 %vm896_vm0, %v970_v24 }
 0x364   : > { %v998_v28 = vpop.f32.mrf.mxu3 }
 0x365   : > { %v1001_v29 = vmul.f32 0.17677669, %v998_v28  ;;  %2389 = vmatmul.msk.f32.vlgmr.msra.gmra.mxu0 %vm896_vm0, %v1205_v23 }
 0x367   : > { %v1002_v30 = vadd.f32 %v1001_v29, %v3568_v56  ;;  %v835_v29 = vld [vmem:[#allocation14 + $0x78] sm:$0xff] }
 0x369   : > { %v1003_v31 = vsel %vm925_vm1, %v1002_v30, -inf }
 0x36a   : > { %1004 = vmax.xlane.f32.xlu2 %v1003_v31  ;;  %v834_v31 = vld [vmem:[#allocation14 + $0x70] sm:$0xff] }
 0x372   : > { %1137 = vadd.xlane.f32.xlu2 %v1136_v33  ;;  %v833_v33 = vld [vmem:[#allocation14 + $0x68] sm:$0xff] }
 0x3da   : > { %v3587_v34 = vpop.f32.mrf.mxu0 }
 0x3dd   : > { %v1005_v35 = vpop.xlane.xlu2 %1004 }
 0x3de   : > { %v1006_v36 = vsub.f32 %v1002_v30, %v1005_v35  ;;  %v832_v35 = vld [vmem:[#allocation14 + $0x60] sm:$0xff] }
 0x3e0   : > { %v1007_v37 = vmul.f32 1.442695, %v1006_v36  ;;  %v831_v36 = vld [vmem:[#allocation14 + $0x58] sm:$0xff] }
 0x3e2   : > { %2608 = vpow2.f32 %v1007_v37  ;;  %v1229_v38 = vpop.f32.mrf.mxu0  ;;  %v830_v37 = vld [vmem:[#allocation14 + $0x50] sm:$0xff] }
 0x3e3   : > { %v1232_v39 = vmul.f32 0.17677669, %v1229_v38  ;;  %v829_v38 = vld [vmem:[#allocation14 + $0x48] sm:$0xff] }
 0x3e5   : > { %v1233_v40 = vadd.f32 %v1232_v39, %v3568_v56  ;;  %v3596_v45 = vpop.xlane.xlu2 %1137 }
 0x3e6   : > { %v1150_v18 = vand.u32 2147483648, %v3596_v45  ;;  %vm1144_vm14 = vweird.f32 %v3596_v45  ;;  %v1148_v20 = vand.u32 2147483647, %v3596_v45 }
 0x3e7   : > { %v1234_v41 = vsel %vm925_vm1, %v1233_v40, -inf }
 0x3e8   : > { %v2609_v43 = vpop.eup %2608  ;;  %1235 = vmax.xlane.f32.xlu0 %v1234_v41  ;;  %v1151_v25 = vor.u32 1.1754944e-38, %v1150_v18  ;;  %vm1149_vm3 = vcmp.eq.f32.partialorder %v1148_v20, 8.507059e+37  ;;  %v1344_v18 = vld [vmem:[#allocation16 + $0x40] sm:$0xff]  ;;  %v1342_v20 = vld [vmem:[#allocation16 + $0x30] sm:$0xff] }
 0x3e9   : > { %v1009_v44 = vsel %vm925_vm1, %v2609_v43, 0.0 }
 0x3ea   : > { %1010 = vadd.xlane.f32.xlu2 %v1009_v44 }
 0x3fc   : > { %1258 = vrot.lane.b32.xlu0 %v3560_v51, %s3178_s9 }
 0x402   : > { %1028 = vrot.lane.b32.xlu2 %v3560_v51, %s3177_s28 }
 0x45b   : > { %v1236_v46 = vpop.xlane.xlu0 %1235 }
 0x45c   : > { %v1237_v47 = vsub.f32 %v1233_v40, %v1236_v46 }
 0x45d   : > { %v1011_v48 = vpop.xlane.xlu2 %1010 }
 0x45e   : > { %v1238_v49 = vmul.f32 1.442695, %v1237_v47  ;;  %2610 = vrcp.f32 %v1011_v48  ;;  %v1023_v57 = vand.u32 2147483648, %v1011_v48  ;;  %v1021_v59 = vand.u32 2147483647, %v1011_v48 }
 0x45f   : > { %vm1017_vm7 = vweird.f32 %v1011_v48 }
 0x460   : > { %2612 = vpow2.f32 %v1238_v49  ;;  %v1024_v61 = vor.u32 1.1754944e-38, %v1023_v57  ;;  %vm1022_vm9 = vcmp.eq.f32.partialorder %v1021_v59, 8.507059e+37  ;;  %v3179_v49 = vmov 128.0   ;;  %v1364_v57 = vld [vmem:[#allocation17 + $0x60] sm:$0xff] }
 0x461   : > { %2614 = vrcp.f32 %v3596_v45 }
 0x464   : > { %v2611_v50 = vpop.eup %2610 }
 0x465   : > { %v1013_v52 = vmul.f32 %v2611_v50, %v1011_v48  ;;  %v1029_v53 = vpop.permute.xlu2 %1028  ;;  %vm1018_vm6 = vweird.f32 %v2611_v50 }
 0x466   : > { %v2613_v54 = vpop.eup %2612  ;;  %1049 = vmatpush.msrb.mxu3 %v1029_v53  ;;  %vm1019_vm8 = vmor %vm1017_vm7, %vm1018_vm6  ;;  %v1365_v53 = vld [vmem:[#allocation17 + $0x68] sm:$0xff]  ;;  %vm1497_vm7 = vcmask 130048  }
 0x467   : > { %v1014_v55 = vsub.f32 1.0, %v1013_v52  ;;  %v1240_v56 = vsel %vm925_vm1, %v2613_v54, 0.0  ;;  %v2615_v6 = vpop.eup %2614  ;;  %v1366_v52 = vld [vmem:[#allocation17 + $0x70] sm:$0xff] }
 0x468   : > { %1241 = vadd.xlane.f32.xlu1 %v1240_v56  ;;  %1069 = vmatpush.msra.mxu3 %v827_v2  ;;  %v1140_v8 = vmul.f32 %v2615_v6, %v3596_v45  ;;  %vm1145_vm11 = vweird.f32 %v2615_v6  ;;  %v1358_v2 = vld [vmem:[#allocation17 + $0x30] sm:$0xff] }
 0x469   : > { %v1015_v58 = vmul.f32 %v2611_v50, %v1014_v55  ;;  %vm1146_vm2 = vmor %vm1144_vm14, %vm1145_vm11  ;;  %v1350_v55 = vld [vmem:[#allocation16 + $0x70] sm:$0xff] }
 0x46a   : > { %1070 = vmatpush.msra.mxu3 %v826_v3  ;;  %v1141_v9 = vsub.f32 1.0, %v1140_v8  ;;  %v1357_v3 = vld [vmem:[#allocation17 + $0x28] sm:$0xff] }
 0x46b   : > { %v1016_v60 = vadd.f32 %v2611_v50, %v1015_v58  ;;  %v1363_v58 = vld [vmem:[#allocation17 + $0x58] sm:$0xff] }
 0x46c   : > { %1071 = vmatpush.msra.mxu3 %v825_v4  ;;  %v1142_v12 = vmul.f32 %v2615_v6, %v1141_v9 }
 0x46d   : > { %v1020_v62 = vsel %vm1019_vm8, %v2611_v50, %v1016_v60  ;;  %v1367_v50 = vld [vmem:[#allocation17 + $0x78] sm:$0xff]  ;;  %v1362_v60 = vld [vmem:[#allocation17 + $0x50] sm:$0xff] }
 0x46e   : > { %v1025_v63 = vsel %vm1022_vm9, %v1024_v61, %v1020_v62  ;;  %v1259_v0 = vpop.permute.xlu0 %1258  ;;  %1072 = vmatpush.msra.mxu3 %v824_v5  ;;  %v1143_v16 = vadd.f32 %v2615_v6, %v1142_v12  ;;  %1420 = vmatpush.msrb.mxu0 %v1367_v50  ;;  %v1361_v61 = vld [vmem:[#allocation17 + $0x48] sm:$0xff]  ;;  %v1356_v5 = vld [vmem:[#allocation17 + $0x20] sm:$0xff]  ;;  %v1354_v12 = vld [vmem:[#allocation17 + $0x10] sm:$0xff] }
 0x46f   : > { %1279 = vmatpush.msra.mxu1 %v1259_v0  ;;  %v1026_v1 = vmul.f32 %v2609_v43, %v1025_v63  ;;  %v1360_v63 = vld [vmem:[#allocation17 + $0x40] sm:$0xff]  ;;  %v1359_v0 = vld [vmem:[#allocation17 + $0x38] sm:$0xff]  ;;  %v1370_v50 = vld [vmem:[#allocation19 + $0x10] sm:$0xff] }
 0x470   : > { %v1147_v24 = vsel %vm1146_vm2, %v2615_v6, %v1143_v16  ;;  %1421 = vmatpush.msrb.mxu0 %v1366_v52  ;;  %v3623_v16 = vld [vmem:[%s3510_s17] sm:$0xff] }
 0x471   : > { %2381 = vmatmul.msk.f32.vlgmr.msrb.gmra.mxu3 %vm925_vm1, %v1026_v1  ;;  %v1152_v26 = vsel %vm1149_vm3, %v1151_v25, %v1147_v24  ;;  %v1339_v24 = vld [vmem:[#allocation16 + $0x18] sm:$0xff]  ;;  %v1338_v25 = vld [vmem:[#allocation16 + $0x10] sm:$0xff] }
 0x472   : > { %v1153_v28 = vmul.f32 %v3583_v32, %v1152_v26  ;;  %1195 = vmatpush.msrb.mxu3 %v831_v36  ;;  %v828_v32 = vld [vmem:[#allocation14 + $0x40] sm:$0xff]  ;;  %1422 = vmatpush.msrb.mxu0 %v1365_v53  ;;  %v1337_v26 = vld [vmem:[#allocation16 + $0x8] sm:$0xff] }
 0x473   : > { %v1369_v53 = vld [vmem:[#allocation19 + $0x8] sm:$0xff] }
 0x474   : > { %1196 = vmatpush.msrb.mxu3 %v830_v37  ;;  %1423 = vmatpush.msrb.mxu0 %v1364_v57  ;;  %v1378_v37 = vld [vmem:[#allocation19 + $0x50] sm:$0xff] }
 0x476   : > { %1197 = vmatpush.msrb.mxu3 %v829_v38  ;;  %1424 = vmatpush.msrb.mxu0 %v1363_v58 }
 0x478   : > { %1198 = vmatpush.msrb.mxu3 %v828_v32  ;;  %1425 = vmatpush.msrb.mxu0 %v1362_v60  ;;  %v1377_v32 = vld [vmem:[#allocation19 + $0x48] sm:$0xff] }
 0x47a   : > { %1426 = vmatpush.msrb.mxu0 %v1361_v61 }
 0x47c   : > { %1427 = vmatpush.msrb.mxu0 %v1360_v63  ;;  %v3647_v63 = vld [vmem:[%s656_s27] sm:$0xff] }
 0x47e   : > { %1428 = vmatpush.msrb.mxu0 %v1359_v0 }
 0x480   : > { %1429 = vmatpush.msrb.mxu0 %v1358_v2 }
 0x481   : > { %1154 = vrot.lane.b32.xlu1 %v3560_v51, %s3176_s19 }
 0x482   : > { %1430 = vmatpush.msrb.mxu0 %v1357_v3 }
 0x484   : > { %1431 = vmatpush.msrb.mxu0 %v1356_v5 }
 0x4db   : > { %v1242_v7 = vpop.xlane.xlu1 %1241 }
 0x4dc   : > { %2616 = vrcp.f32 %v1242_v7  ;;  %v1254_v13 = vand.u32 2147483648, %v1242_v7  ;;  %v1252_v15 = vand.u32 2147483647, %v1242_v7  ;;  %vm1248_vm12 = vweird.f32 %v1242_v7 }
 0x4dd   : > { %2618 = vrcp.f32 %v3179_v49 }
 0x4de   : > { %v1255_v19 = vor.u32 1.1754944e-38, %v1254_v13  ;;  %vm1253_vm15 = vcmp.eq.f32.partialorder %v1252_v15, 8.507059e+37  ;;  %v1347_v13 = vld [vmem:[#allocation16 + $0x58] sm:$0xff]  ;;  %v1346_v15 = vld [vmem:[#allocation16 + $0x50] sm:$0xff] }
 0x4e2   : > { %v2617_v10 = vpop.eup %2616 }
 0x4e3   : > { %v1244_v11 = vmul.f32 %v2617_v10, %v1242_v7  ;;  %vm1249_vm10 = vweird.f32 %v2617_v10  ;;  %v2619_v56 = vpop.eup %2618 }
 0x4e4   : > { %vm1250_vm13 = vmor %vm1248_vm12, %vm1249_vm10  ;;  %v1312_v59 = vmul.f32 128.0, %v2619_v56 }
 0x4e5   : > { %v1245_v51 = vsub.f32 1.0, %v1244_v11  ;;  %v1355_v11 = vld [vmem:[#allocation17 + $0x18] sm:$0xff] }
 0x4e6   : > { %v1313_v62 = vsub.f32 1.0, %v1312_v59  ;;  %1432 = vmatpush.msrb.mxu0 %v1355_v11  ;;  %v1391_v11 = vld [vmem:[#allocation20 + $0x38] sm:$0xff] }
 0x4e7   : > { %v1246_v14 = vmul.f32 %v2617_v10, %v1245_v51  ;;  %v1353_v51 = vld [vmem:[#allocation17 + $0x8] sm:$0xff] }
 0x4e8   : > { %v1314_v1 = vmul.f32 %v2619_v56, %v1313_v62  ;;  %1433 = vmatpush.msrb.mxu0 %v1354_v12  ;;  %v1390_v12 = vld [vmem:[#allocation20 + $0x30] sm:$0xff] }
 0x4e9   : > { %v1247_v17 = vadd.f32 %v2617_v10, %v1246_v14  ;;  %v1352_v14 = vld [vmem:[#allocation17] sm:$0xff] }
 0x4ea   : > { %v1315_v4 = vadd.f32 %v2619_v56, %v1314_v1  ;;  %1434 = vmatpush.msrb.mxu0 %v1353_v51  ;;  %v1389_v51 = vld [vmem:[#allocation20 + $0x28] sm:$0xff] }
 0x4eb   : > { %v1251_v21 = vsel %vm1250_vm13, %v2617_v10, %v1247_v17  ;;  %v1345_v17 = vld [vmem:[#allocation16 + $0x48] sm:$0xff] }
 0x4ec   : > { %v1256_v22 = vsel %vm1253_vm15, %v1255_v19, %v1251_v21  ;;  %1435 = vmatpush.msrb.mxu0 %v1352_v14  ;;  %v1343_v19 = vld [vmem:[#allocation16 + $0x38] sm:$0xff] }
 0x4ed   : > { %v1257_v23 = vmul.f32 %v2613_v54, %v1256_v22  ;;  %v1351_v54 = vld [vmem:[#allocation16 + $0x78] sm:$0xff]  ;;  %1436 = vmatmul.f32.vlgmr.msrb.gmra.mxu0 %v3623_v16  ;;  %v1341_v22 = vld [vmem:[#allocation16 + $0x28] sm:$0xff] }
 0x4ee   : > { %v3627_v21 = vld [vmem:[%s3510_s17 + $0x8] sm:$0xff] }
 0x4ef   : > { %2390 = vmatmul.msk.f32.vlgmr.msra.gmra.mxu1 %vm925_vm1, %v1257_v23  ;;  %v1340_v23 = vld [vmem:[#allocation16 + $0x20] sm:$0xff] }
 0x4f3   : > { %v1155_v27 = vpop.permute.xlu1 %1154 }
 0x4f4   : > { %v1051_v30 = vpop.f32.mrf.mxu3  ;;  %1175 = vmatpush.msrb.mxu2 %v1155_v27  ;;  %v1336_v27 = vld [vmem:[#allocation16] sm:$0xff] }
 0x4f5   : > { %2382 = vmatmul.msk.f32.vlgmr.msra.gmra.mxu3 %vm896_vm0, %v1051_v30  ;;  %2386 = vmatmul.msk.f32.vlgmr.msrb.gmra.mxu2 %vm925_vm1, %v1153_v28  ;;  %vm1316_vm1 = vweird.f32 %v2619_v56  ;;  %v1383_v28 = vld [vmem:[#allocation19 + $0x78] sm:$0xff]  ;;  %v1381_v30 = vld [vmem:[#allocation19 + $0x68] sm:$0xff] }
 0x4f6   : > { %1299 = vmatpush.msra.mxu2 %v835_v29  ;;  %1400 = vmatpush.msra.mxu3 %v1351_v54  ;;  %v3615_v6 = vsel %vm1316_vm1, %v2619_v56, %v1315_v4  ;;  %v1382_v29 = vld [vmem:[#allocation19 + $0x70] sm:$0xff] }
 0x4f7   : > { %1439 = vmatmul.f32.gmra.mxu0 %v3627_v21  ;;  %1443 = vmatpush.msrb.mxu1 %v1383_v28 }
 0x4f8   : > { %1300 = vmatpush.msra.mxu2 %v834_v31  ;;  %1401 = vmatpush.msra.mxu3 %v1350_v55  ;;  %v1380_v31 = vld [vmem:[#allocation19 + $0x60] sm:$0xff] }
 0x4f9   : > { %1444 = vmatpush.msrb.mxu1 %v1382_v29  ;;  %v1368_v55 = vld [vmem:[#allocation19] sm:$0xff] }
 0x4fa   : > { %1301 = vmatpush.msra.mxu2 %v833_v33  ;;  %v1379_v33 = vld [vmem:[#allocation19 + $0x58] sm:$0xff] }
 0x4fb   : > { %1445 = vmatpush.msrb.mxu1 %v1381_v30 }
 0x4fc   : > { %1302 = vmatpush.msra.mxu2 %v832_v35 }
 0x4fd   : > { %1446 = vmatpush.msrb.mxu1 %v1380_v31 }
 0x4ff   : > { %1447 = vmatpush.msrb.mxu1 %v1379_v33 }
 0x501   : > { %1448 = vmatpush.msrb.mxu1 %v1378_v37 }
 0x503   : > { %1449 = vmatpush.msrb.mxu1 %v1377_v32 }
 0x56c   : > { %v1281_v39 = vpop.f32.mrf.mxu1 }
 0x56d   : > { %2391 = vmatmul.msk.f32.vlgmr.msra.gmra.mxu2 %vm896_vm0, %v1281_v39  ;;  %v1376_v39 = vld [vmem:[#allocation19 + $0x40] sm:$0xff] }
 0x56e   : > { %1450 = vmatpush.msrb.mxu1 %v1376_v39 }
 0x578   : > { %v1177_v40 = vpop.f32.mrf.mxu2  ;;  %v1074_v41 = vpop.f32.mrf.mxu3 }
 0x579   : > { %2387 = vmatmul.msk.f32.vlgmr.msrb.gmra.mxu3 %vm896_vm0, %v1177_v40  ;;  %v1098_v43 = vadd.f32 %v3587_v34, %v1074_v41  ;;  %v1349_v34 = vld [vmem:[#allocation16 + $0x68] sm:$0xff]  ;;  %v1375_v40 = vld [vmem:[#allocation19 + $0x38] sm:$0xff]  ;;  %v1374_v41 = vld [vmem:[#allocation19 + $0x30] sm:$0xff] }
 0x57a   : > { %1402 = vmatpush.msra.mxu3 %v1349_v34  ;;  %1451 = vmatpush.msrb.mxu1 %v1375_v40  ;;  %v1437_v34 = vpop.f32.mrf.mxu0 }
 0x57c   : > { %1452 = vmatpush.msrb.mxu1 %v1374_v41 }
 0x582   : > { %v1440_v58 = vpop.f32.mrf.mxu0 }
 0x583   : > { %2392 = vmatpush.xpose.msk.msrb.mxu2 %vm896_vm0, %v1440_v58 }
 0x587   : > { %2393 = vmatpush.xpose.msk.msrb.mxu2 %vm896_vm0, %v1437_v34 }
 0x5f0   : > { %v1304_v46 = vpop.f32.mrf.mxu2 }
 0x5fc   : > { %v1200_v44 = vpop.f32.mrf.mxu3 }
 0x5fd   : > { %v1203_v45 = vadd.f32 %v1200_v44, %v1098_v43  ;;  %v1373_v44 = vld [vmem:[#allocation19 + $0x28] sm:$0xff] }
 0x5fe   : > { %1453 = vmatpush.msrb.mxu1 %v1373_v44 }
 0x5ff   : > { %v1307_v47 = vadd.f32 %v1304_v46, %v1203_v45  ;;  %v1372_v46 = vld [vmem:[#allocation19 + $0x20] sm:$0xff] }
 0x600   : > { %1454 = vmatpush.msrb.mxu1 %v1372_v46  ;;  %v1387_v46 = vld [vmem:[#allocation20 + $0x18] sm:$0xff] }
 0x601   : > { %v1308_v48 = vadd.f32 %v1307_v47, %v3548_v42  ;;  %v1348_v42 = vld [vmem:[#allocation16 + $0x60] sm:$0xff] }
 0x602   : > { %1403 = vmatpush.msra.mxu3 %v1348_v42 }
 0x603   : > { %1309 = vadd.xlane.f32.xlu2 %v1308_v48 }
 0x604   : > { %1404 = vmatpush.msra.mxu3 %v1347_v13  ;;  %v1388_v13 = vld [vmem:[#allocation20 + $0x20] sm:$0xff] }
 0x606   : > { %1405 = vmatpush.msra.mxu3 %v1346_v15 }
 0x608   : > { %1406 = vmatpush.msra.mxu3 %v1345_v17 }
 0x60a   : > { %1407 = vmatpush.msra.mxu3 %v1344_v18 }
 0x60c   : > { %1408 = vmatpush.msra.mxu3 %v1343_v19 }
 0x60e   : > { %1409 = vmatpush.msra.mxu3 %v1342_v20 }
 0x610   : > { %1410 = vmatpush.msra.mxu3 %v1341_v22 }
 0x612   : > { %1411 = vmatpush.msra.mxu3 %v1340_v23 }
 0x614   : > { %1412 = vmatpush.msra.mxu3 %v1339_v24 }
 0x616   : > { %1413 = vmatpush.msra.mxu3 %v1338_v25 }
 0x618   : > { %1414 = vmatpush.msra.mxu3 %v1337_v26 }
 0x61a   : > { %1415 = vmatpush.msra.mxu3 %v1336_v27 }
 0x61c   : > { %1649 = vmatpush.msrb.mxu3 %v1391_v11 }
 0x61e   : > { %1650 = vmatpush.msrb.mxu3 %v1390_v12 }
 0x620   : > { %1651 = vmatpush.msrb.mxu3 %v1389_v51 }
 0x622   : > { %1652 = vmatpush.msrb.mxu3 %v1388_v13 }
 0x676   : > { %v1310_v7 = vpop.xlane.xlu2 %1309 }
 0x677   : > { %v1318_v8 = vmul.f32 %v3615_v6, %v1310_v7 }
 0x679   : > { %v3618_v9 = vsub.f32 %v1308_v48, %v1318_v8  ;;  %v1371_v48 = vld [vmem:[#allocation19 + $0x18] sm:$0xff] }
 0x67a   : > { %1455 = vmatpush.msrb.mxu1 %v1371_v48  ;;  %v1385_v48 = vld [vmem:[#allocation20 + $0x8] sm:$0xff] }
 0x67b   : > { %v1320_v10 = vmul.f32 %v3618_v9, %v3618_v9 }
 0x67c   : > { %1456 = vmatpush.msrb.mxu1 %v1370_v50 }
 0x67d   : > { %1321 = vadd.xlane.f32.xlu0 %v1320_v10 }
 0x67e   : > { %1457 = vmatpush.msrb.mxu1 %v1369_v53 }
 0x680   : > { %1458 = vmatpush.msrb.mxu1 %v1368_v55 }
 0x681   : > { %1459 = vmatmul.f32.vlgmr.msrb.gmra.mxu1 %v3623_v16 }
 0x689   : > { %1462 = vmatmul.f32.gmra.mxu1 %v3627_v21 }
 0x691   : > { %1549 = vrot.lane.b32.xlu0 %v1440_v58, %s3177_s28 }
 0x6f0   : > { %v1322_v35 = vpop.xlane.xlu0 %1321 }
 0x6f1   : > { %v1323_v36 = vmul.f32 %v1322_v35, %v3615_v6 }
 0x6f3   : > { %v1324_v38 = vadd.f32 1e-05, %v1323_v36 }
 0x6f5   : > { %2620 = vrsqrt.f32 %v1324_v38  ;;  %vm1331_vm5 = vweird.f32 %v1324_v38 }
 0x6fb   : > { %v2621_v43 = vpop.eup %2620 }
 0x6fc   : > { %v1326_v45 = vmul.f32 %v2621_v43, %v1324_v38  ;;  %vm1332_vm4 = vweird.f32 %v2621_v43 }
 0x6fd   : > { %vm1333_vm6 = vmor %vm1331_vm5, %vm1332_vm4 }
 0x6fe   : > { %v1327_v47 = vmul.f32 %v2621_v43, %v1326_v45  ;;  %v1460_v59 = vpop.f32.mrf.mxu1 }
 0x700   : > { %v1328_v49 = vmul.f32 0.5, %v1327_v47  ;;  %v1386_v47 = vld [vmem:[#allocation20 + $0x10] sm:$0xff] }
 0x702   : > { %v1329_v52 = vsub.f32 1.5, %v1328_v49  ;;  %v1384_v49 = vld [vmem:[#allocation20] sm:$0xff] }
 0x703   : > { %v1550_v61 = vpop.permute.xlu0 %1549 }
 0x704   : > { %v1330_v54 = vmul.f32 %v2621_v43, %v1329_v52 }
 0x706   : > { %v1334_v56 = vsel %vm1333_vm6, %v2621_v43, %v1330_v54  ;;  %v1463_v60 = vpop.f32.mrf.mxu1 }
 0x707   : > { %v3632_v57 = vmul.f32 %v1334_v56, %v3618_v9  ;;  %1539 = vmatpush.msra.mxu2 %v1463_v60  ;;  %v3656_v10 = vpack.i.bf16 %v1460_v59, %v1463_v60 }
 0x709   : > { %1416 = vmatmul.f32.vlgmr.msra.gmra.mxu3 %v3632_v57  ;;  %1540 = vmatpush.msra.mxu2 %v1460_v59 }
 0x78c   : > { %v3640_v42 = vpop.f32.mrf.mxu3 }
 0x78d   : > { %2394 = vmatmul.msk.f32.vlgmr.msrb.gmra.mxu2 %vm896_vm0, %v3640_v42 }
 0x78e   : > { %2396 = vmatpush.xpose.msk.msrb.mxu2 %vm896_vm0, %v1550_v61 }
 0x810   : > { %v1492_v62 = vpop.f32.mrf.mxu2 }
 0x811   : > { %v1495_v0 = vmul.f32 0.17677669, %v1492_v62 }
 0x813   : > { %v1496_v1 = vadd.f32 %v1495_v0, %v3647_v63 }
 0x815   : > { %v1498_v2 = vsel %vm1497_vm7, %v1496_v1, -inf }
 0x816   : > { %1499 = vmax.xlane.f32.xlu1 %v1498_v2 }
 0x82f   : > { %1547 = vrot.lane.b32.xlu1 %v1437_v34, %s3177_s28 }
 0x889   : > { %v1500_v3 = vpop.xlane.xlu1 %1499 }
 0x88a   : > { %v1501_v4 = vsub.f32 %v1496_v1, %v1500_v3 }
 0x88c   : > { %v1502_v5 = vmul.f32 1.442695, %v1501_v4 }
 0x88e   : > { %2622 = vpow2.f32 %v1502_v5 }
 0x894   : > { %v2623_v7 = vpop.eup %2622 }
 0x895   : > { %v1504_v8 = vsel %vm1497_vm7, %v2623_v7, 0.0 }
 0x896   : > { %1505 = vadd.xlane.f32.xlu2 %v1504_v8 }
 0x8a1   : > { %v1548_v9 = vpop.permute.xlu1 %1547 }
 0x8a2   : > { %2397 = vmatpush.xpose.msk.msrb.mxu2 %vm896_vm0, %v1548_v9 }
 0x8ae   : > { %1545 = vrot.lane.b32.xlu2 %v3640_v42, %s3177_s28 }
 0x8b6   : > { %2588 = vrot.lane.b32.xlu2 %v3656_v10, %s3177_s28 }
 0x8be   : > { %1795 = vrot.lane.b32.xlu2 %v1440_v58, %s3178_s9 }
 0x8c6   : > { %1684 = vrot.lane.b32.xlu2 %v1440_v58, %s3176_s19 }
 0x8ce   : > { %1793 = vrot.lane.b32.xlu2 %v1437_v34, %s3178_s9 }
 0x8d6   : > { %1682 = vrot.lane.b32.xlu2 %v1437_v34, %s3176_s19 }
 0x909   : > { %v1506_v14 = vpop.xlane.xlu2 %1505 }
 0x90a   : > { %2624 = vrcp.f32 %v1506_v14  ;;  %v1518_v19 = vand.u32 2147483648, %v1506_v14  ;;  %v1516_v21 = vand.u32 2147483647, %v1506_v14  ;;  %vm1512_vm9 = vweird.f32 %v1506_v14 }
 0x90c   : > { %v1519_v23 = vor.u32 1.1754944e-38, %v1518_v19  ;;  %vm1517_vm11 = vcmp.eq.f32.partialorder %v1516_v21, 8.507059e+37 }
 0x910   : > { %v2625_v15 = vpop.eup %2624 }
 0x911   : > { %v1508_v16 = vmul.f32 %v2625_v15, %v1506_v14  ;;  %v1546_v17 = vpop.permute.xlu2 %1545  ;;  %vm1513_vm8 = vweird.f32 %v2625_v15 }
 0x912   : > { %vm1514_vm10 = vmor %vm1512_vm9, %vm1513_vm8 }
 0x913   : > { %v1509_v18 = vsub.f32 1.0, %v1508_v16 }
 0x915   : > { %v1510_v20 = vmul.f32 %v2625_v15, %v1509_v18 }
 0x917   : > { %v1511_v22 = vadd.f32 %v2625_v15, %v1510_v20 }
 0x919   : > { %v1515_v24 = vsel %vm1514_vm10, %v2625_v15, %v1511_v22  ;;  %v2589_v25 = vpop.permute.xlu2 %2588 }
 0x91a   : > { %v1520_v26 = vsel %vm1517_vm11, %v1519_v23, %v1515_v24  ;;  %v2590_v27 = vunpack.i.l.bf16 %v2589_v25  ;;  %v2591_v29 = vunpack.i.h.bf16 %v2589_v25 }
 0x91b   : > { %v1521_v28 = vmul.f32 %v2623_v7, %v1520_v26 }
 0x91d   : > { %2395 = vmatmul.msk.f32.vlgmr.msra.gmra.mxu2 %vm1497_vm7, %v1521_v28  ;;  %v1399_v28 = vld [vmem:[#allocation20 + $0x78] sm:$0xff] }
 0x91e   : > { %1628 = vmatpush.msra.mxu2 %v2590_v27  ;;  %v1395_v27 = vld [vmem:[#allocation20 + $0x58] sm:$0xff] }
 0x91f   : > { %1782 = vmatpush.msra.mxu1 %v1395_v27  ;;  %v1935_v27 = vld [vmem:[#allocation22 + $0x60] sm:$0xff] }
 0x920   : > { %1629 = vmatpush.msra.mxu2 %v2591_v29  ;;  %v1394_v29 = vld [vmem:[#allocation20 + $0x50] sm:$0xff] }
 0x921   : > { %v1796_v30 = vpop.permute.xlu2 %1795  ;;  %1783 = vmatpush.msra.mxu1 %v1394_v29  ;;  %v1933_v29 = vld [vmem:[#allocation22 + $0x50] sm:$0xff] }
 0x925   : > { %2398 = vmatmul.msk.f32.vlgmr.msrb.gmra.mxu2 %vm896_vm0, %v1546_v17 }
 0x926   : > { %1672 = vmatpush.msrb.mxu2 %v1387_v46 }
 0x928   : > { %1673 = vmatpush.msrb.mxu2 %v1386_v47 }
 0x929   : > { %v1685_v31 = vpop.permute.xlu2 %1684 }
 0x92a   : > { %2402 = vmatpush.xpose.msk.msra.mxu3 %vm896_vm0, %v1685_v31  ;;  %1674 = vmatpush.msrb.mxu2 %v1385_v48 }
 0x92c   : > { %1675 = vmatpush.msrb.mxu2 %v1384_v49 }
 0x931   : > { %v1794_v33 = vpop.permute.xlu2 %1793 }
 0x939   : > { %v1683_v35 = vpop.permute.xlu2 %1682 }
 0x93a   : > { %2403 = vmatpush.xpose.msk.msra.mxu3 %vm896_vm0, %v1683_v35  ;;  %v1397_v35 = vld [vmem:[#allocation20 + $0x68] sm:$0xff] }
 0x9a0   : > { %v1542_v36 = vpop.f32.mrf.mxu2 }
 0x9a8   : > { %v1574_v37 = vpop.f32.mrf.mxu2 }
 0x9a9   : > { %v1577_v38 = vmul.f32 0.17677669, %v1574_v37 }
 0x9ab   : > { %v1578_v32 = vadd.f32 %v1577_v38, %v3647_v63 }
 0x9ad   : > { %v1579_v39 = vsel %vm1497_vm7, %v1578_v32, -inf }
 0x9ae   : > { %1580 = vmax.xlane.f32.xlu0 %v1579_v39 }
 0x9c2   : > { %1791 = vrot.lane.b32.xlu0 %v3640_v42, %s3178_s9 }
 0xa21   : > { %v1581_v40 = vpop.xlane.xlu0 %1580 }
 0xa22   : > { %v1582_v41 = vsub.f32 %v1578_v32, %v1581_v40 }
 0xa24   : > { %v1583_v43 = vmul.f32 1.442695, %v1582_v41 }
 0xa26   : > { %2626 = vpow2.f32 %v1583_v43 }
 0xa2c   : > { %v2627_v44 = vpop.eup %2626 }
 0xa2d   : > { %v1585_v45 = vsel %vm1497_vm7, %v2627_v44, 0.0 }
 0xa2e   : > { %1586 = vadd.xlane.f32.xlu1 %v1585_v45 }
 0xa34   : > { %v1792_v62 = vpop.permute.xlu0 %1791 }
 0xa47   : > { %1680 = vrot.lane.b32.xlu1 %v3640_v42, %s3176_s19 }
 0xaa1   : > { %v1587_v50 = vpop.xlane.xlu1 %1586 }
 0xaa2   : > { %2628 = vrcp.f32 %v1587_v50  ;;  %v1599_v55 = vand.u32 2147483648, %v1587_v50  ;;  %v1597_v34 = vand.u32 2147483647, %v1587_v50  ;;  %vm1593_vm13 = vweird.f32 %v1587_v50 }
 0xaa4   : > { %v1600_v59 = vor.u32 1.1754944e-38, %v1599_v55  ;;  %vm1598_vm15 = vcmp.eq.f32.partialorder %v1597_v34, 8.507059e+37 }
 0xaa8   : > { %v2629_v52 = vpop.eup %2628 }
 0xaa9   : > { %v1589_v53 = vmul.f32 %v2629_v52, %v1587_v50  ;;  %vm1594_vm12 = vweird.f32 %v2629_v52 }
 0xaaa   : > { %vm1595_vm14 = vmor %vm1593_vm13, %vm1594_vm12 }
 0xaab   : > { %v1590_v54 = vsub.f32 1.0, %v1589_v53 }
 0xaad   : > { %v1591_v56 = vmul.f32 %v2629_v52, %v1590_v54 }
 0xaaf   : > { %v1592_v58 = vadd.f32 %v2629_v52, %v1591_v56 }
 0xab1   : > { %v1596_v42 = vsel %vm1595_vm14, %v2629_v52, %v1592_v58 }
 0xab2   : > { %v1601_v60 = vsel %vm1598_vm15, %v1600_v59, %v1596_v42  ;;  %v1392_v42 = vld [vmem:[#allocation20 + $0x40] sm:$0xff] }
 0xab3   : > { %v1602_v61 = vmul.f32 %v2627_v44, %v1601_v60  ;;  %v1396_v60 = vld [vmem:[#allocation20 + $0x60] sm:$0xff] }
 0xab5   : > { %2399 = vmatmul.msk.f32.vlgmr.msra.gmra.mxu2 %vm1497_vm7, %v1602_v61 }
 0xab6   : > { %2407 = vmatpush.xpose.msk.msra.mxu2 %vm896_vm0, %v1796_v30  ;;  %v1398_v30 = vld [vmem:[#allocation20 + $0x70] sm:$0xff] }
 0xab9   : > { %v1681_v1 = vpop.permute.xlu1 %1680 }
 0xaba   : > { %2408 = vmatpush.xpose.msk.msra.mxu2 %vm896_vm0, %v1794_v33  ;;  %v1393_v33 = vld [vmem:[#allocation20 + $0x48] sm:$0xff] }
 0xabb   : > { %1784 = vmatpush.msra.mxu1 %v1393_v33  ;;  %v1932_v33 = vld [vmem:[#allocation22 + $0x48] sm:$0xff] }
 0xabd   : > { %2401 = vmatmul.msk.f32.vlgmr.msrb.gmra.mxu2 %vm896_vm0, %v1542_v36  ;;  %1785 = vmatpush.msra.mxu1 %v1392_v42  ;;  %v2005_v42 = vld [vmem:[#allocation23 + $0x40] sm:$0xff] }
 0xac5   : > { %2409 = vmatmul.msk.f32.vlgmr.msra.gmra.mxu2 %vm896_vm0, %v1792_v62 }
 0xb38   : > { %v1631_v0 = vpop.f32.mrf.mxu2 }
 0xb39   : > { %2400 = vmatmul.msk.f32.vlgmr.msrb.gmra.mxu3 %vm896_vm0, %v1631_v0 }
 0xb40   : > { %v3681_v2 = vpop.f32.mrf.mxu2 }
 0xb41   : > { %2404 = vmatmul.msk.f32.vlgmr.msra.gmra.mxu3 %vm896_vm0, %v1681_v1 }
 0xb48   : > { %v1820_v3 = vpop.f32.mrf.mxu2 }
 0xb49   : > { %v1823_v4 = vmul.f32 0.17677669, %v1820_v3 }
 0xb4b   : > { %v1824_v5 = vadd.f32 %v1823_v4, %v3647_v63 }
 0xb4d   : > { %v1825_v7 = vsel %vm1497_vm7, %v1824_v5, -inf }
 0xb4e   : > { %1826 = vmax.xlane.f32.xlu2 %v1825_v7 }
 0xbbc   : > { %v3686_v8 = vpop.f32.mrf.mxu3 }
 0xbbd   : > { %v1678_v0 = vadd.f32 %v3681_v2, %v3686_v8 }
 0xbc1   : > { %v1827_v9 = vpop.xlane.xlu2 %1826 }
 0xbc2   : > { %v1828_v11 = vsub.f32 %v1824_v5, %v1827_v9  ;;  %v1953_v9 = vld [vmem:[#allocation22 + $0xf0] sm:$0xff] }
 0xbc3   : > { %1955 = vmatpush.msrb.mxu1 %v1953_v9  ;;  %v2001_v9 = vld [vmem:[#allocation23 + $0x20] sm:$0xff] }
 0xbc4   : > { %v1829_v12 = vmul.f32 1.442695, %v1828_v11  ;;  %v1709_v51 = vpop.f32.mrf.mxu3  ;;  %v1954_v11 = vld [vmem:[#allocation22 + $0xf8] sm:$0xff] }
 0xbc5   : > { %v1712_v13 = vmul.f32 0.17677669, %v1709_v51  ;;  %1975 = vmatpush.msrb.mxu2 %v1954_v11  ;;  %v1952_v51 = vld [vmem:[#allocation22 + $0xe8] sm:$0xff] }
 0xbc6   : > { %2630 = vpow2.f32 %v1829_v12  ;;  %v1951_v12 = vld [vmem:[#allocation22 + $0xe0] sm:$0xff] }
 0xbc7   : > { %v1713_v14 = vadd.f32 %v1712_v13, %v3647_v63  ;;  %v1949_v13 = vld [vmem:[#allocation22 + $0xd0] sm:$0xff]  ;;  %1956 = vmatpush.msrb.mxu1 %v1951_v12  ;;  %1976 = vmatpush.msrb.mxu2 %v1952_v51  ;;  %v2000_v12 = vld [vmem:[#allocation23 + $0x18] sm:$0xff] }
 0xbc9   : > { %v1714_v15 = vsel %vm1497_vm7, %v1713_v14, -inf  ;;  %1957 = vmatpush.msrb.mxu1 %v1949_v13  ;;  %v1999_v13 = vld [vmem:[#allocation23 + $0x10] sm:$0xff] }
 0xbca   : > { %1715 = vmax.xlane.f32.xlu0 %v1714_v15  ;;  %v1947_v15 = vld [vmem:[#allocation22 + $0xc0] sm:$0xff] }
 0xbcb   : > { %1958 = vmatpush.msrb.mxu1 %v1947_v15 }
 0xbcc   : > { %v2631_v16 = vpop.eup %2630 }
 0xbcd   : > { %v1831_v17 = vsel %vm1497_vm7, %v2631_v16, 0.0 }
 0xbce   : > { %1832 = vadd.xlane.f32.xlu1 %v1831_v17 }
 0xbde   : > { %2598 = vrot.lane.b32.xlu0 %v3656_v10, %s3176_s19 }
 0xc3d   : > { %v1716_v18 = vpop.xlane.xlu0 %1715 }
 0xc3e   : > { %v1717_v19 = vsub.f32 %v1713_v14, %v1716_v18  ;;  %v1950_v14 = vld [vmem:[#allocation22 + $0xd8] sm:$0xff]  ;;  %v1945_v18 = vld [vmem:[#allocation22 + $0xb0] sm:$0xff] }
 0xc3f   : > { %1977 = vmatpush.msrb.mxu2 %v1950_v14  ;;  %1959 = vmatpush.msrb.mxu1 %v1945_v18  ;;  %v1997_v18 = vld [vmem:[#allocation23] sm:$0xff] }
 0xc40   : > { %v1718_v20 = vmul.f32 1.442695, %v1717_v19  ;;  %v1946_v19 = vld [vmem:[#allocation22 + $0xb8] sm:$0xff] }
 0xc41   : > { %v1833_v25 = vpop.xlane.xlu1 %1832 }
 0xc42   : > { %2632 = vpow2.f32 %v1718_v20  ;;  %v1845_v32 = vand.u32 2147483648, %v1833_v25  ;;  %vm1839_vm3 = vweird.f32 %v1833_v25  ;;  %v1843_v39 = vand.u32 2147483647, %v1833_v25  ;;  %v1943_v20 = vld [vmem:[#allocation22 + $0xa0] sm:$0xff] }
 0xc43   : > { %2634 = vrcp.f32 %v1833_v25  ;;  %1960 = vmatpush.msrb.mxu1 %v1943_v20  ;;  %v2015_v20 = vld [vmem:[#allocation23 + $0x90] sm:$0xff] }
 0xc44   : > { %v1846_v43 = vor.u32 1.1754944e-38, %v1845_v32  ;;  %vm1844_vm4 = vcmp.eq.f32.partialorder %v1843_v39, 8.507059e+37  ;;  %v1926_v32 = vld [vmem:[#allocation22 + $0x18] sm:$0xff]  ;;  %v1923_v39 = vld [vmem:[#allocation22] sm:$0xff] }
 0xc48   : > { %v2633_v21 = vpop.eup %2632 }
 0xc49   : > { %v1720_v22 = vsel %vm1497_vm7, %v2633_v21, 0.0  ;;  %v2635_v26 = vpop.eup %2634 }
 0xc4a   : > { %1721 = vadd.xlane.f32.xlu2 %v1720_v22  ;;  %v1835_v31 = vmul.f32 %v2635_v26, %v1833_v25  ;;  %vm1840_vm2 = vweird.f32 %v2635_v26  ;;  %v1941_v22 = vld [vmem:[#allocation22 + $0x90] sm:$0xff] }
 0xc4b   : > { %vm1841_vm1 = vmor %vm1839_vm3, %vm1840_vm2  ;;  %1961 = vmatpush.msrb.mxu1 %v1941_v22  ;;  %v1937_v25 = vld [vmem:[#allocation22 + $0x70] sm:$0xff]  ;;  %v2013_v22 = vld [vmem:[#allocation23 + $0x80] sm:$0xff] }
 0xc4c   : > { %v1836_v36 = vsub.f32 1.0, %v1835_v31  ;;  %v1931_v31 = vld [vmem:[#allocation22 + $0x40] sm:$0xff] }
 0xc4e   : > { %v1837_v37 = vmul.f32 %v2635_v26, %v1836_v36  ;;  %v1930_v36 = vld [vmem:[#allocation22 + $0x38] sm:$0xff] }
 0xc50   : > { %v2599_v23 = vpop.permute.xlu0 %2598 }
 0xc51   : > { %v2600_v63 = vunpack.i.l.bf16 %v2599_v23  ;;  %v2601_v24 = vunpack.i.h.bf16 %v2599_v23  ;;  %v1942_v23 = vld [vmem:[#allocation22 + $0x98] sm:$0xff] }
 0xc53   : > { %1761 = vmatpush.msra.mxu0 %v2600_v63  ;;  %v1939_v63 = vld [vmem:[#allocation22 + $0x80] sm:$0xff] }
 0xc54   : > { %1962 = vmatpush.msrb.mxu1 %v1939_v63 }
 0xc55   : > { %1762 = vmatpush.msra.mxu0 %v2601_v24  ;;  %v1940_v24 = vld [vmem:[#allocation22 + $0x88] sm:$0xff] }
 0xc56   : > { %1963 = vmatpush.msrb.mxu1 %v1937_v25 }
 0xc57   : > { %1893 = vmatpush.msrb.mxu0 %v1399_v28  ;;  %v1936_v28 = vld [vmem:[#allocation22 + $0x68] sm:$0xff] }
 0xc58   : > { %1964 = vmatpush.msrb.mxu1 %v1935_v27 }
 0xc59   : > { %1894 = vmatpush.msrb.mxu0 %v1398_v30  ;;  %v1934_v30 = vld [vmem:[#allocation22 + $0x58] sm:$0xff] }
 0xc5a   : > { %1965 = vmatpush.msrb.mxu1 %v1933_v29 }
 0xc5b   : > { %1895 = vmatpush.msrb.mxu0 %v1397_v35  ;;  %v1929_v35 = vld [vmem:[#allocation22 + $0x30] sm:$0xff] }
 0xc5c   : > { %1966 = vmatpush.msrb.mxu1 %v1931_v31 }
 0xc5d   : > { %1896 = vmatpush.msrb.mxu0 %v1396_v60  ;;  %v2021_v60 = vld [vmem:[#allocation23 + $0xc0] sm:$0xff] }
 0xc5e   : > { %1967 = vmatpush.msrb.mxu1 %v1929_v35 }
 0xc62   : > { %2593 = vrot.lane.b32.xlu2 %v3656_v10, %s3178_s9  ;;  %v1838_v10 = vadd.f32 %v2635_v26, %v1837_v37  ;;  %v1927_v37 = vld [vmem:[#allocation22 + $0x20] sm:$0xff] }
 0xc63   : > { %1968 = vmatpush.msrb.mxu1 %v1927_v37 }
 0xc64   : > { %v1842_v40 = vsel %vm1841_vm1, %v2635_v26, %v1838_v10  ;;  %v1938_v26 = vld [vmem:[#allocation22 + $0x78] sm:$0xff]  ;;  %v1925_v10 = vld [vmem:[#allocation22 + $0x10] sm:$0xff] }
 0xc65   : > { %v1847_v46 = vsel %vm1844_vm4, %v1846_v43, %v1842_v40  ;;  %v1924_v40 = vld [vmem:[#allocation22 + $0x8] sm:$0xff]  ;;  %1969 = vmatpush.msrb.mxu1 %v1925_v10  ;;  %v2011_v43 = vld [vmem:[#allocation23 + $0x70] sm:$0xff] }
 0xc66   : > { %v1848_v54 = vmul.f32 %v2631_v16, %v1847_v46  ;;  %v1948_v16 = vld [vmem:[#allocation22 + $0xc8] sm:$0xff]  ;;  %v2027_v46 = vld [vmem:[#allocation23 + $0xf0] sm:$0xff] }
 0xc67   : > { %1978 = vmatpush.msrb.mxu2 %v1948_v16  ;;  %1970 = vmatpush.msrb.mxu1 %v1923_v39 }
 0xc69   : > { %1979 = vmatpush.msrb.mxu2 %v1946_v19  ;;  %v2016_v19 = vld [vmem:[#allocation23 + $0x98] sm:$0xff] }
 0xcbd   : > { %v1722_v38 = vpop.xlane.xlu2 %1721 }
 0xcbe   : > { %2636 = vrcp.f32 %v1722_v38  ;;  %v1734_v49 = vand.u32 2147483648, %v1722_v38  ;;  %v1732_v53 = vand.u32 2147483647, %v1722_v38  ;;  %vm1728_vm6 = vweird.f32 %v1722_v38 }
 0xcc0   : > { %v1735_v56 = vor.u32 1.1754944e-38, %v1734_v49  ;;  %vm1733_vm9 = vcmp.eq.f32.partialorder %v1732_v53, 8.507059e+37  ;;  %v2025_v49 = vld [vmem:[#allocation23 + $0xe0] sm:$0xff]  ;;  %v2024_v53 = vld [vmem:[#allocation23 + $0xd8] sm:$0xff] }
 0xcc4   : > { %v2637_v41 = vpop.eup %2636 }
 0xcc5   : > { %v1724_v44 = vmul.f32 %v2637_v41, %v1722_v38  ;;  %v2594_v45 = vpop.permute.xlu2 %2593  ;;  %vm1729_vm5 = vweird.f32 %v2637_v41  ;;  %v1928_v38 = vld [vmem:[#allocation22 + $0x28] sm:$0xff] }
 0xcc6   : > { %v2595_v47 = vunpack.i.l.bf16 %v2594_v45  ;;  %v2596_v50 = vunpack.i.h.bf16 %v2594_v45  ;;  %vm1730_vm8 = vmor %vm1728_vm6, %vm1729_vm5  ;;  %v2010_v45 = vld [vmem:[#allocation23 + $0x68] sm:$0xff] }
 0xcc7   : > { %v1725_v48 = vsub.f32 1.0, %v1724_v44  ;;  %v2028_v44 = vld [vmem:[#allocation23 + $0xf8] sm:$0xff] }
 0xcc8   : > { %1872 = vmatpush.msrb.mxu3 %v2595_v47  ;;  %v2026_v47 = vld [vmem:[#allocation23 + $0xe8] sm:$0xff] }
 0xcc9   : > { %v1726_v52 = vmul.f32 %v2637_v41, %v1725_v48  ;;  %v2009_v48 = vld [vmem:[#allocation23 + $0x60] sm:$0xff] }
 0xcca   : > { %1873 = vmatpush.msrb.mxu3 %v2596_v50  ;;  %v2008_v50 = vld [vmem:[#allocation23 + $0x58] sm:$0xff] }
 0xccb   : > { %v1727_v55 = vadd.f32 %v2637_v41, %v1726_v52  ;;  %2410 = vmatmul.msk.f32.vlgmr.msrb.gmra.mxu3 %vm1497_vm7, %v1848_v54 }
 0xccd   : > { %v1731_v34 = vsel %vm1730_vm8, %v2637_v41, %v1727_v55  ;;  %v2012_v41 = vld [vmem:[#allocation23 + $0x78] sm:$0xff]  ;;  %v2007_v55 = vld [vmem:[#allocation23 + $0x50] sm:$0xff] }
 0xcce   : > { %v1736_v58 = vsel %vm1733_vm9, %v1735_v56, %v1731_v34  ;;  %2029 = vmatpush.msra.mxu3 %v2012_v41  ;;  %v2023_v56 = vld [vmem:[#allocation23 + $0xd0] sm:$0xff] }
 0xccf   : > { %v1737_v59 = vmul.f32 %v2633_v21, %v1736_v58  ;;  %v1944_v21 = vld [vmem:[#allocation22 + $0xa8] sm:$0xff] }
 0xcd0   : > { %1980 = vmatpush.msrb.mxu2 %v1944_v21  ;;  %2030 = vmatpush.msra.mxu3 %v2011_v43  ;;  %v2006_v58 = vld [vmem:[#allocation23 + $0x48] sm:$0xff] }
 0xcd1   : > { %2405 = vmatmul.msk.f32.vlgmr.msra.gmra.mxu0 %vm1497_vm7, %v1737_v59  ;;  %v2022_v59 = vld [vmem:[#allocation23 + $0xc8] sm:$0xff] }
 0xcd2   : > { %1981 = vmatpush.msrb.mxu2 %v1942_v23  ;;  %2049 = vmatpush.msra.mxu0 %v2028_v44  ;;  %v2014_v21 = vld [vmem:[#allocation23 + $0x88] sm:$0xff] }
 0xcd3   : > { %2031 = vmatpush.msra.mxu3 %v2010_v45 }
 0xcd4   : > { %1982 = vmatpush.msrb.mxu2 %v1940_v24  ;;  %2050 = vmatpush.msra.mxu0 %v2027_v46 }
 0xcd5   : > { %2032 = vmatpush.msra.mxu3 %v2009_v48 }
 0xcd6   : > { %1983 = vmatpush.msrb.mxu2 %v1938_v26  ;;  %2051 = vmatpush.msra.mxu0 %v2026_v47 }
 0xcd7   : > { %2033 = vmatpush.msra.mxu3 %v2008_v50 }
 0xcd8   : > { %1984 = vmatpush.msrb.mxu2 %v1936_v28  ;;  %2052 = vmatpush.msra.mxu0 %v2025_v49 }
 0xcd9   : > { %2034 = vmatpush.msra.mxu3 %v2007_v55 }
 0xcda   : > { %1985 = vmatpush.msrb.mxu2 %v1934_v30  ;;  %2053 = vmatpush.msra.mxu0 %v2024_v53 }
 0xcdb   : > { %2035 = vmatpush.msra.mxu3 %v2006_v58 }
 0xcdc   : > { %1986 = vmatpush.msrb.mxu2 %v1932_v33  ;;  %2054 = vmatpush.msra.mxu0 %v2023_v56 }
 0xcdd   : > { %2036 = vmatpush.msra.mxu3 %v2005_v42 }
 0xcde   : > { %1987 = vmatpush.msrb.mxu2 %v1930_v36  ;;  %2055 = vmatpush.msra.mxu0 %v2022_v59 }
 0xce0   : > { %1988 = vmatpush.msrb.mxu2 %v1928_v38  ;;  %2056 = vmatpush.msra.mxu0 %v2021_v60 }
 0xce2   : > { %1989 = vmatpush.msrb.mxu2 %v1926_v32 }
 0xce4   : > { %1990 = vmatpush.msrb.mxu2 %v1924_v40 }
 0xd4e   : > { %v1764_v61 = vpop.f32.mrf.mxu0  ;;  %v1875_v62 = vpop.f32.mrf.mxu3 }
 0xd4f   : > { %2406 = vmatmul.msk.f32.vlgmr.msra.gmra.mxu1 %vm896_vm0, %v1764_v61  ;;  %2411 = vmatmul.msk.f32.vlgmr.msrb.gmra.mxu0 %vm896_vm0, %v1875_v62  ;;  %v2004_v61 = vld [vmem:[#allocation23 + $0x38] sm:$0xff] }
 0xd50   : > { %v2020_v62 = vld [vmem:[#allocation23 + $0xb8] sm:$0xff]  ;;  %2037 = vmatpush.msra.mxu3 %v2004_v61 }
 0xd51   : > { %2057 = vmatpush.msra.mxu0 %v2020_v62 }
 0xdcc   : > { %v1787_v1 = vpop.f32.mrf.mxu1  ;;  %v1898_v4 = vpop.f32.mrf.mxu0 }
 0xdcd   : > { %v1790_v3 = vadd.f32 %v1787_v1, %v1678_v0  ;;  %v2003_v0 = vld [vmem:[#allocation23 + $0x30] sm:$0xff] }
 0xdce   : > { %v2019_v1 = vld [vmem:[#allocation23 + $0xb0] sm:$0xff]  ;;  %2038 = vmatpush.msra.mxu3 %v2003_v0 }
 0xdcf   : > { %v1901_v5 = vadd.f32 %v1898_v4, %v1790_v3  ;;  %v2002_v4 = vld [vmem:[#allocation23 + $0x28] sm:$0xff]  ;;  %2058 = vmatpush.msra.mxu0 %v2019_v1 }
 0xdd0   : > { %2039 = vmatpush.msra.mxu3 %v2002_v4 }
 0xdd1   : > { %v1902_v7 = vadd.f32 %v1901_v5, %v3632_v57 }
 0xdd2   : > { %2040 = vmatpush.msra.mxu3 %v2001_v9 }
 0xdd3   : > { %1903 = vadd.xlane.f32.xlu1 %v1902_v7 }
 0xdd4   : > { %2041 = vmatpush.msra.mxu3 %v2000_v12 }
 0xdd6   : > { %2042 = vmatpush.msra.mxu3 %v1999_v13 }
 0xe46   : > { %v1904_v2 = vpop.xlane.xlu1 %1903 }
 0xe47   : > { %v1905_v57 = vmul.f32 %v1904_v2, %v3615_v6 }
 0xe49   : > { %v3704_v8 = vsub.f32 %v1902_v7, %v1905_v57  ;;  %v2018_v7 = vld [vmem:[#allocation23 + $0xa8] sm:$0xff] }
 0xe4a   : > { %2059 = vmatpush.msra.mxu0 %v2018_v7  ;;  %v1998_v57 = vld [vmem:[#allocation23 + $0x8] sm:$0xff] }
 0xe4b   : > { %v1907_v17 = vmul.f32 %v3704_v8, %v3704_v8  ;;  %2043 = vmatpush.msra.mxu3 %v1998_v57 }
 0xe4d   : > { %1908 = vadd.xlane.f32.xlu1 %v1907_v17  ;;  %v2017_v17 = vld [vmem:[#allocation23 + $0xa0] sm:$0xff]  ;;  %2044 = vmatpush.msra.mxu3 %v1997_v18 }
 0xe4e   : > { %2060 = vmatpush.msra.mxu0 %v2017_v17 }
 0xe50   : > { %2061 = vmatpush.msra.mxu0 %v2016_v19 }
 0xe52   : > { %2062 = vmatpush.msra.mxu0 %v2015_v20 }
 0xe54   : > { %2063 = vmatpush.msra.mxu0 %v2014_v21 }
 0xe56   : > { %2064 = vmatpush.msra.mxu0 %v2013_v22 }
 0xec0   : > { %v1909_v52 = vpop.xlane.xlu1 %1908 }
 0xec1   : > { %v1910_v54 = vmul.f32 %v1909_v52, %v3615_v6 }
 0xec3   : > { %v1911_v34 = vadd.f32 1e-05, %v1910_v54 }
 0xec5   : > { %2638 = vrsqrt.f32 %v1911_v34  ;;  %vm1918_vm7 = vweird.f32 %v1911_v34 }
 0xecb   : > { %v2639_v3 = vpop.eup %2638 }
 0xecc   : > { %v1913_v5 = vmul.f32 %v2639_v3, %v1911_v34  ;;  %vm1919_vm0 = vweird.f32 %v2639_v3 }
 0xecd   : > { %vm1920_vm10 = vmor %vm1918_vm7, %vm1919_vm0 }
 0xece   : > { %v1914_v11 = vmul.f32 %v2639_v3, %v1913_v5 }
 0xed0   : > { %v1915_v51 = vmul.f32 0.5, %v1914_v11 }
 0xed2   : > { %v1916_v14 = vsub.f32 1.5, %v1915_v51 }
 0xed4   : > { %v1917_v15 = vmul.f32 %v2639_v3, %v1916_v14 }
 0xed6   : > { %v1921_v16 = vsel %vm1920_vm10, %v2639_v3, %v1917_v15 }
 0xed7   : > { %v1922_v2 = vmul.f32 %v1921_v16, %v3704_v8 }
 0xed9   : > { %1971 = vmatmul.f32.vlgmr.msrb.gmra.mxu1 %v1922_v2  ;;  %1991 = vmatmul.f32.vlgmr.msrb.gmra.mxu2 %v1922_v2 }
 0xf56   : > { %v1972_v23 = vpop.f32.mrf.mxu1 }
 0xf57   : > { %v1995_v63 = vmax.f32 %v1972_v23, 0.0 }
 0xf59   : > { %2045 = vmatmul.f32.vlgmr.msra.gmra.mxu3 %v1995_v63 }
 0xf5c   : > { %v1992_v8 = vpop.f32.mrf.mxu2 }
 0xf5d   : > { %v1996_v24 = vmax.f32 %v1992_v8, 0.0 }
 0xf5f   : > { %2065 = vmatmul.f32.vlgmr.msra.gmra.mxu0 %v1996_v24 }
 0xfdc   : > { %v2046_v25 = vpop.f32.mrf.mxu3  ;;  %v2066_v26 = vpop.f32.mrf.mxu0 }
 0xfdd   : > { %v2067_v27 = vadd.f32 %v2066_v26, %v2046_v25 }
 0xfdf   : > { %v2069_v28 = vadd.f32 %v2067_v27, %v1922_v2 }
 0xfe1   : > { %2070 = vadd.xlane.f32.xlu2 %v2069_v28 }
0x1054   : > { %v2071_v29 = vpop.xlane.xlu2 %2070 }
0x1055   : > { %v2072_v30 = vmul.f32 %v2071_v29, %v3615_v6 }
0x1057   : > { %v2073_v31 = vsub.f32 %v2069_v28, %v2072_v30 }
0x1059   : > { %v2074_v33 = vmul.f32 %v2073_v31, %v2073_v31 }
0x105b   : > { %2075 = vadd.xlane.f32.xlu0 %v2074_v33 }
0x10ce   : > { %v2076_v35 = vpop.xlane.xlu0 %2075 }
0x10cf   : > { %v2077_v36 = vmul.f32 %v2076_v35, %v3615_v6 }
0x10d1   : > { %v2078_v37 = vadd.f32 1e-05, %v2077_v36 }
0x10d3   : > { %2640 = vrsqrt.f32 %v2078_v37  ;;  %vm2085_vm12 = vweird.f32 %v2078_v37 }
0x10d9   : > { %v2641_v38 = vpop.eup %2640 }
0x10da   : > { %v2080_v10 = vmul.f32 %v2641_v38, %v2078_v37  ;;  %vm2086_vm11 = vweird.f32 %v2641_v38 }
0x10db   : > { %vm2087_vm13 = vmor %vm2085_vm12, %vm2086_vm11 }
0x10dc   : > { %v2081_v32 = vmul.f32 %v2641_v38, %v2080_v10 }
0x10de   : > { %v2082_v39 = vmul.f32 0.5, %v2081_v32 }
0x10e0   : > { %v2083_v40 = vsub.f32 1.5, %v2082_v39 }
0x10e2   : > { %v2084_v41 = vmul.f32 %v2641_v38, %v2083_v40 }
0x10e4   : > { %v2088_v6 = vsel %vm2087_vm13, %v2641_v38, %v2084_v41 }
0x10e5   : > { %v2089_v43 = vmul.f32 %v2088_v6, %v2073_v31 }
0x10e7   : > { %2090 = vst [vmem:[%s766_s5] sm:$0xff] %v2089_v43 }
0x10e8   : > { %3089 = shalt.err (!%p3086_p13)
}
0x10e9   : > { %2465 = dma.vmem_to_hbm [thread:$0]  (%p3356_p0), %s2105_s7, 128, %s2107_s4, %s2092_s20  }
0x10ea PF: > { %s3820_s14 = sld [smem:[#allocation36_spill]]  ;;  %p3822_p1 = scmp.ge.s32.totalorder %s3160_s16, 2 }
0x10ec   : > { %p2512_p6 = pnand %p3822_p1, %p3364_p5 }
0x10ee   : > { %p2513_p7 = pneg %p2512_p6 }
0x10f0   : > { %s2118_s28 = sand.u32 1, %s3820_s14  }
0x10f1   : > { %s2119_s9 = scalar_lea.sflag [#allocation4], %s2118_s28 }
0x10f2   : > { %3143 = dma.done.wait (%p2513_p7), %s2119_s9, 128  }
0x10f3   : > { %3145 = vsyncadd (%p2513_p7), %s2119_s9, 4294967168  ;;  %s3823_s16 = sld [smem:[#allocation39_spill]]  ;;  %s3826_s29 = smov %s3152_s30 }
0x10f4   : > { %s3824_s18 = sld [smem:[#allocation37_spill]] }
0x10f5   : > { %s3825_s15 = sld [smem:[#allocation40_spill]] }
0x10f9   : > { %p38_p10 = scmp.ge.s32.totalorder %s3823_s16, 4  }
0x10fa   : > { %s3827_s30 = smov %s3824_s18 }
0x10fb   :  { %40 = sbr.rel (!%p38_p10) target bundleno = 22 (0x16), region = 198 }
0x1100   :  { %2125 = vsyncpa [#allocation3], 1 }
0x1101   :  { %2127 = vsyncpa [#allocation3 + $0x1], 1 }
0x1102   :  { %2128 = vsyncpa [#allocation6], 1 }
0x1103   :  { %2130 = vsyncpa [#allocation6 + $0x1], 1 }
0x1104   :  { %2131 = vsyncpa [#allocation9], 1 }
0x1105   :  { %2133 = vsyncpa [#allocation9 + $0x1], 1 }
0x1106   :  { %2134 = vsyncpa [#allocation12], 1 }
0x1107   :  { %2135 = vsyncpa [#allocation15], 1 }
0x1108   :  { %2136 = vsyncpa [#allocation18], 1 }
0x1109   :  { %2137 = vsyncpa [#allocation21], 1 }
0x110a   :  { %2138 = vsyncpa [#allocation24], 1 }
0x110b   :  { %2139 = vsyncpa [#allocation4], 1 }
0x110c   :  { %2141 = vsyncpa [#allocation4 + $0x1], 1 }

</bundles_post_ra>
